<compile_context>
chip_gen: v6e
topology: v6e:2x2x1
jax: 0.10.0
libtpu: 0.0.40
codegen_flags: <defaults>
</compile_context>

<pallas_src>
import math
from collections import OrderedDict
from functools import partial

import jax
import jax.numpy as jnp
from jax.experimental import pallas as pl
from jax.experimental.pallas import tpu as pltpu

# ------------------------- synthetic configuration (small) -------------------------
H, W = 16, 16
C_IN = 3
D_FLAT = C_IN * H * W                # 768
W_NET = 32                           # hidden width of network_fn / network_fine (analogue of 256)
IN0, IN1 = 16, 32                    # layer input dims
EMB_DIM = 128                        # embedder output dim
HN_ROWS, HN_COLS = W_NET, 128        # hypernetwork output matrix (rows x cols)
HN_FLAT = HN_ROWS * HN_COLS          # 4096
N_SUPPORT, N_QUERY = 3, 2
IMG2EMBED = 2                        # args.img2embed
N_RAND = 64                          # args.N_rand
LMDA_STEPS = 10                      # args.lmda_steps
N_PAD = 8                            # sublane padding for the to_concat batch (7 -> 8)
MLP_OUT_PAD = 128                    # lane-dense query-MLP output width (rgb = cols 0:3)

# hypernet-output streaming over the grid
NUM_CHUNKS = 4
ROWS_PER_CHUNK = HN_ROWS // NUM_CHUNKS          # 8 rows of the (32,128) hn view per step
CHUNK_K = ROWS_PER_CHUNK * EMB_DIM              # 1024 contraction length per step

# target layers of the hypernetwork (hn.target_layers / filter_params)
FILTER_PARAMS = OrderedDict([
    ('layer0.weight', (W_NET, IN0)),
    ('layer0.bias',   (W_NET,)),
    ('layer1.weight', (W_NET, IN1)),
    ('layer1.bias',   (W_NET,)),
])


# ================================ fused Pallas kernel ===============================
def fused_hypermaml_kernel(n_valid, lmda,
                           x_ref, ew1_ref, eb1_ref, w2q_ref, b2_ref,
                           wbase_ref, bbase_ref, feat_ref,
                           updw_ref, updb_ref, planes_ref, rgb_ref,
                           p_sc):
    """Embedder -> hypernetwork -> additive parameter update -> query MLP, fused.

    n_valid / lmda are compile-time Python constants (baked via functools.partial).
    Grid axis j streams the (4096,128) permuted hypernet weight in (1024,128) blocks.
    """
    j = pl.program_id(0)

    # ---- step 0: embedder, planes, and the block-diagonal e-placement matrix P --------
    @pl.when(j == 0)
    def _():
        x = x_ref[...]                                                  # (N_PAD, D_FLAT) f32
        emb = jnp.dot(x.astype(jnp.bfloat16), ew1_ref[...],
                      preferred_element_type=jnp.float32) + eb1_ref[...]   # (N_PAD, EMB_DIM)
        emb = jnp.maximum(emb, 0.0)
        row = jax.lax.broadcasted_iota(jnp.int32, emb.shape, 0)
        emb = jnp.where(row < n_valid, emb, 0.0)                        # mask padded rows
        e_mean = jnp.sum(emb, axis=0, keepdims=True) * (1.0 / float(n_valid))  # (1, EMB_DIM)

        # P[q, q*EMB + k] = e_mean[k]; zero elsewhere.  Then the per-chunk hn row-block is
        # the plain 2-D matmul P @ W2Q_block (no reshape of the flat hn output needed).
        e8 = jnp.broadcast_to(e_mean, (ROWS_PER_CHUNK, EMB_DIM))        # (8,128)
        e_tile = jnp.concatenate([e8] * (CHUNK_K // EMB_DIM), axis=1)   # (8,1024)
        q_idx = jax.lax.broadcasted_iota(jnp.int32, (ROWS_PER_CHUNK, CHUNK_K), 0)
        l_idx = jax.lax.broadcasted_iota(jnp.int32, (ROWS_PER_CHUNK, CHUNK_K), 1)
        band = (l_idx >= q_idx * EMB_DIM) & (l_idx < (q_idx + 1) * EMB_DIM)
        p_sc[...] = jnp.where(band, e_tile, 0.0).astype(jnp.bfloat16)

        # TODO(synk): real embedder plane generation (TriPlane) is an external dependency;
        # synthetic planes surrogate kept from the previous version.
        planes_ref[...] = jnp.tanh(0.5 * x)

    # ---- every step: one (8,128) row-block of hn output + additive slab update --------
    hn_chunk = jnp.dot(p_sc[...], w2q_ref[...],
                       preferred_element_type=jnp.float32) + b2_ref[...]     # (8,128) f32
    row0 = pl.multiple_of(j * ROWS_PER_CHUNK, ROWS_PER_CHUNK)
    updw_ref[pl.ds(row0, ROWS_PER_CHUNK), :] = wbase_ref[...] + lmda * hn_chunk
    updb_ref[pl.ds(row0, ROWS_PER_CHUNK), :] = bbase_ref[...] + lmda * hn_chunk

    # ---- last step: query MLP straight off the updated slabs (get_hn_params layout) ----
    @pl.when(j == NUM_CHUNKS - 1)
    def _():
        Wsl = updw_ref[...]                                             # (32,128) weight slab
        Bsl = updb_ref[...]                                             # (32,128) bias slab
        lane = jax.lax.broadcasted_iota(jnp.int32, (HN_ROWS, HN_COLS), 1)
        sub = jax.lax.broadcasted_iota(jnp.int32, (HN_ROWS, HN_COLS), 0)

        # layer0: weight = W[:, 0:16], bias = B[:, 16]; feat carries a 1.0 at col 16.
        w0sel = jnp.where(lane == IN0, Bsl, Wsl)
        h = jax.lax.dot_general(feat_ref[...], w0sel, (((1,), (1,)), ((), ())),
                                preferred_element_type=jnp.float32)      # (N_RAND, 32)
        h = jnp.maximum(h, 0.0)

        # layer1: weight = W[:, 16:48], bias = B[:, 48].  Place h at cols 16:48 and a
        # 1.0 bias-carrier at col 48 via a placement matmul (no lane slicing / transposes).
        shift = (lane == sub + IN0).astype(jnp.float32)                  # S[k, 16+k] = 1
        h128 = jnp.dot(h, shift, preferred_element_type=jnp.float32)     # cols 16:48 = h
        carrier = (jax.lax.broadcasted_iota(jnp.int32, (N_RAND, HN_COLS), 1)
                   == IN0 + W_NET).astype(jnp.float32)
        h128 = h128 + carrier                                            # col 48 = 1
        w1sel = jnp.where(lane == IN0 + W_NET, Bsl, Wsl)                 # (32,128)
        w1ext = jnp.concatenate(
            [w1sel, jnp.zeros((MLP_OUT_PAD - W_NET, HN_COLS), jnp.float32)], axis=0)
        o = jax.lax.dot_general(h128, w1ext, (((1,), (1,)), ((), ())),
                                preferred_element_type=jnp.float32)      # (N_RAND, 128)
        rgb_ref[...] = jax.nn.sigmoid(o)          # sigmoid fused (EUP); cols 0:3 used


# ================================ Pallas wrapper ====================================
def fused_hypermaml_call(x_pad, wbase2d, bbase2d, feat128, n_valid, lmda,
                         embed_w1, embed_b1, hn_w2q, hn_b2):
    kernel = partial(fused_hypermaml_kernel, int(n_valid), float(lmda))
    updw, updb, planes_flat, rgb_full = pl.pallas_call(
        kernel,
        grid=(NUM_CHUNKS,),
        out_shape=(
            jax.ShapeDtypeStruct((HN_ROWS, HN_COLS), jnp.float32),   # updated weight slab
            jax.ShapeDtypeStruct((HN_ROWS, HN_COLS), jnp.float32),   # updated bias slab
            jax.ShapeDtypeStruct((N_PAD, D_FLAT), jnp.float32),      # planes (synthetic)
            jax.ShapeDtypeStruct((N_RAND, MLP_OUT_PAD), jnp.float32),  # sigmoid(MLP out)
        ),
        in_specs=[
            pl.BlockSpec((N_PAD, D_FLAT), lambda j: (0, 0)),            # x_pad
            pl.BlockSpec((D_FLAT, EMB_DIM), lambda j: (0, 0)),          # embed_w1 (bf16)
            pl.BlockSpec((1, EMB_DIM), lambda j: (0, 0)),               # embed_b1
            pl.BlockSpec((CHUNK_K, HN_COLS), lambda j: (j, 0)),         # hn_w2q (streamed)
            pl.BlockSpec((ROWS_PER_CHUNK, HN_COLS), lambda j: (j, 0)),  # hn_b2 row-block
            pl.BlockSpec((ROWS_PER_CHUNK, HN_COLS), lambda j: (j, 0)),  # base weight slab
            pl.BlockSpec((ROWS_PER_CHUNK, HN_COLS), lambda j: (j, 0)),  # base bias slab
            pl.BlockSpec((N_RAND, HN_COLS), lambda j: (0, 0)),          # query features
        ],
        out_specs=(
            pl.BlockSpec((HN_ROWS, HN_COLS), lambda j: (0, 0)),         # resident slab
            pl.BlockSpec((HN_ROWS, HN_COLS), lambda j: (0, 0)),         # resident slab
            pl.BlockSpec((N_PAD, D_FLAT), lambda j: (0, 0)),
            pl.BlockSpec((N_RAND, MLP_OUT_PAD), lambda j: (0, 0)),
        ),
        scratch_shapes=[pltpu.VMEM((ROWS_PER_CHUNK, CHUNK_K), jnp.bfloat16)],  # P matrix
        compiler_params=pltpu.CompilerParams(dimension_semantics=("arbitrary",)),
    )(x_pad,
      embed_w1.astype(jnp.bfloat16),
      embed_b1.reshape(1, EMB_DIM).astype(jnp.float32),
      hn_w2q.astype(jnp.bfloat16),
      hn_b2.reshape(HN_ROWS, HN_COLS).astype(jnp.float32),
      wbase2d, bbase2d, feat128)
    return updw, updb, planes_flat, rgb_full


# ================================ JAX glue (reference semantics) ====================
def positional_encoding(x, num_freqs=4):
    """get_embedder(4, 0): [x, sin(2^k x), cos(2^k x)] for k in 0..3."""
    outs = [x]
    for k in range(num_freqs):
        f = 2.0 ** k
        outs.append(jnp.sin(x * f))
        outs.append(jnp.cos(x * f))
    return jnp.concatenate(outs, axis=-1)


def hn_param_layout(params, prev=0):
    """Verbatim port of get_hn_params' prev/curr bookkeeping.

    Returns name -> (rows, col_lo, col_hi, is_bias) into the (HN_ROWS, HN_COLS) hn output,
    plus the final `prev` (network_fine continues at the same offset as the reference).
    The reference's column aliasing (layer0.bias col 16 overlaps layer1.weight's 16:48)
    is preserved exactly — hence separate weight/bias base slabs.
    """
    layout = OrderedDict()
    for l_name, l_shape in params.items():
        if 'weight' in l_name:
            curr = prev + l_shape[1]
            layout[l_name] = (l_shape[0], prev, curr, False)
        if 'bias' in l_name:
            curr = prev
            layout[l_name] = (l_shape[0], curr, curr + 1, True)
            prev += 1
        prev = curr
    return layout, prev


def pack_base_into_hn_layout(fn_params, fine_params, layout_fn, layout_fine):
    """Pack base network_fn / network_fine params into two (32,128) slabs matching the
    hypernetwork-output layout (weights and biases kept separate due to column aliasing)."""
    wslab = jnp.zeros((HN_ROWS, HN_COLS), jnp.float32)
    bslab = jnp.zeros((HN_ROWS, HN_COLS), jnp.float32)
    for layout, params in ((layout_fn, fn_params), (layout_fine, fine_params)):
        for name, (rows, lo, hi, is_bias) in layout.items():
            p = params[name].astype(jnp.float32)
            if is_bias:
                bslab = bslab.at[:rows, lo].set(p)
            else:
                wslab = wslab.at[:rows, lo:hi].set(p)
    return wslab, bslab


def unpack_updated(updw2d, updb2d, layout):
    """Slice the updated (base + lmda*hn) slabs back into per-layer parameters."""
    out = OrderedDict()
    for name, (rows, lo, hi, is_bias) in layout.items():
        out[name] = updb2d[:rows, lo] if is_bias else updw2d[:rows, lo:hi]
    return out


def pack_params_as_images(params):
    """params with shape[0]==W_NET -> cat(dim=1) -> flatten -> (-1, 3, H, W)."""
    tensors = [p.reshape(-1, 1) if p.ndim == 1 else p
               for p in params.values() if p.shape[0] == W_NET]
    flat = jnp.concatenate(tensors, axis=1).reshape(-1)
    n_layers = flat.shape[0] // (H * W * 3)
    flat = flat[:n_layers * H * W * 3]
    return flat.reshape(-1, 3, H, W)


def pack_hn_w2(w2):
    """(EMB_DIM, HN_FLAT) hypernet weight -> permuted (HN_ROWS*EMB_DIM, HN_COLS) layout
    W2Q[r*EMB + k, c] = w2[k, r*128 + c], so chunk j's (8,128) hn row-block is P @ W2Q_blk."""
    return (w2.reshape(EMB_DIM, HN_ROWS, HN_COLS)
              .transpose(1, 0, 2)
              .reshape(HN_ROWS * EMB_DIM, HN_COLS))


def get_rays(h, w, K, c2w):
    i, j = jnp.meshgrid(jnp.arange(w, dtype=jnp.float32),
                        jnp.arange(h, dtype=jnp.float32), indexing='xy')
    dirs = jnp.stack([(i - K[0, 2]) / K[0, 0],
                      -(j - K[1, 2]) / K[1, 1],
                      -jnp.ones_like(i)], -1)
    rays_d = jnp.sum(dirs[..., None, :] * c2w[:3, :3], -1)
    rays_o = jnp.broadcast_to(c2w[:3, -1], rays_d.shape)
    return rays_o, rays_d


def sample_rays(images, poses, K, key):
    """Fully traced (no device->host readback) so the whole forward jits as one program."""
    k_img, k_sel = jax.random.split(key)
    img_i = jax.random.randint(k_img, (), 0, images.shape[0])        # traced index
    target = images[img_i]
    pose = poses[img_i, :3, :4]
    rays_o, rays_d = get_rays(H, W, K, pose)
    coords = jnp.stack(jnp.meshgrid(jnp.linspace(0., H - 1., H),
                                    jnp.linspace(0., W - 1., W), indexing='ij'), -1)
    coords = coords.reshape(-1, 2)
    select_inds = jax.random.permutation(k_sel, coords.shape[0])[:N_RAND]  # no replacement
    sc = coords[select_inds].astype(jnp.int32)
    rays_o = rays_o[sc[:, 0], sc[:, 1]]
    rays_d = rays_d[sc[:, 0], sc[:, 1]]
    batch_rays = jnp.stack([rays_o, rays_d], 0)
    target_s = target[sc[:, 0], sc[:, 1]]
    return batch_rays, target_s


def build_query_features(batch_rays):
    """Surrogate NeRF query features, laid out for the fused kernel's layer0 contraction:
    cols 0:12 = [rays_o, rays_d, sin, cos], cols 12:16 = 0 pad, col 16 = 1 (bias carrier)."""
    rays_o, rays_d = batch_rays[0], batch_rays[1]
    feat = jnp.concatenate([rays_o, rays_d, jnp.sin(rays_d), jnp.cos(rays_d)], axis=-1)
    feat128 = jnp.zeros((N_RAND, HN_COLS), jnp.float32)
    feat128 = feat128.at[:, :feat.shape[1]].set(feat)
    feat128 = feat128.at[:, IN0].set(1.0)
    return feat128


def inner_train_step(network_fn_params, network_fine_params, shot_images, shot_poses,
                     feat128, embed_w1, embed_b1, hn_w2q, hn_b2, lmda, filter_params):
    imgs = jnp.transpose(shot_images, (0, 3, 1, 2))                  # NHWC -> NCHW
    to_concat = imgs[:IMG2EMBED]

    # args.weight_update: pack network_fn / network_fine params into pseudo-images
    params_fn_img = pack_params_as_images(network_fn_params)
    params_fine_img = pack_params_as_images(network_fine_params)
    to_concat = jnp.concatenate([to_concat, params_fn_img, params_fine_img], axis=0)

    # args.views_update: positional-encode poses, tile to one pseudo-image
    views = positional_encoding(shot_poses.reshape(imgs.shape[0], -1), 4)
    views = views.reshape(-1)
    reproduce = math.ceil(H * W * 3 / views.shape[0])
    views = jnp.tile(views, reproduce)[:H * W * 3].reshape(1, 3, H, W)
    to_concat = jnp.concatenate([to_concat, views], axis=0)

    n = to_concat.shape[0]                                            # static (= 7)
    x_flat = to_concat.reshape(n, -1).astype(jnp.float32)
    x_pad = jnp.zeros((N_PAD, D_FLAT), jnp.float32).at[:n].set(x_flat)

    # column layout of the hypernetwork output (verbatim get_hn_params bookkeeping)
    layout_fn, prev = hn_param_layout(filter_params)
    layout_fine, _ = hn_param_layout(filter_params, prev)             # N_importance > 0

    wbase2d, bbase2d = pack_base_into_hn_layout(
        network_fn_params, network_fine_params, layout_fn, layout_fine)

    # ---- hot path: embedder + hypernet + additive update + query MLP, ONE kernel ----
    updw2d, updb2d, planes_flat, rgb_full = fused_hypermaml_call(
        x_pad, wbase2d, bbase2d, feat128, n, lmda, embed_w1, embed_b1, hn_w2q, hn_b2)

    planes = planes_flat[:n].reshape(n, 3, H, W)
    planesV2 = planes

    # lmda == 1, update_multiply == False  ->  additive hypernet update (done in-kernel).
    # TODO(synk): MAML gradient branch (lmda < 1, inner_train_step_maml) needs the external
    #             NeRF loss and is not implemented here.
    hn_fn = unpack_updated(updw2d, updb2d, layout_fn)
    hn_fine = unpack_updated(updw2d, updb2d, layout_fine)
    upd_fn = OrderedDict((nm, hn_fn[nm] if nm in filter_params else p)
                         for nm, p in network_fn_params.items())
    upd_fine = OrderedDict((nm, hn_fine[nm] if nm in filter_params else p)
                           for nm, p in network_fine_params.items())
    updated_params = {'network_fn': upd_fn, 'network_fine': upd_fine}

    return updated_params, planes, planesV2[:1], rgb_full


# ----------------------------- jitted end-to-end forward ----------------------------
def _forward_impl(shot_images, shot_poses, query_images, query_poses, K, weights, key, lmda):
    batch_rays, target_s = sample_rays(query_images, query_poses, K, key)
    feat128 = build_query_features(batch_rays)
    updated_params, planes, _planesV2, rgb_full = inner_train_step(
        weights['network_fn'], weights['network_fine'], shot_images, shot_poses,
        feat128, weights['embed_w1'], weights['embed_b1'], weights['hn_w2q'],
        weights['hn_b2'], lmda, FILTER_PARAMS)
    # args.planes_generation == 'standalone' -> images = data_shot['images'] (unused below)
    # TODO(synk): full NeRF volume rendering (render(), TriPlane) is an external dependency;
    # the in-kernel MLP on the hyper-updated network_fn serves as the render surrogate.
    rgb = rgb_full[:, :3]
    occlusion_loss = jnp.zeros((), jnp.float32)
    return rgb, target_s, planes, occlusion_loss


_forward_jit = jax.jit(_forward_impl, static_argnums=(7,))   # lmda is compile-time


def hypermaml_forward(data_shot, data_query, epoch, weights):
    lmda = min(epoch / LMDA_STEPS, 1) if LMDA_STEPS != 0 else 1
    if lmda != 1:
        # TODO(synk): 0 <= lmda < 1 requires inner_train_step_maml (external NeRF loss).
        raise NotImplementedError("only the lmda == 1 hypernetwork branch is implemented")
    K = data_shot['hwfk'][3]
    return _forward_jit(data_shot['images'], data_shot['poses'],
                        data_query['images'], data_query['poses'],
                        K, weights, jax.random.PRNGKey(1), float(lmda))


# ==================================== main ==========================================
def init_mlp_params(key):
    k0, k1, k2, k3 = jax.random.split(key, 4)
    return OrderedDict([
        ('layer0.weight', 0.1 * jax.random.normal(k0, (W_NET, IN0), jnp.float32)),
        ('layer0.bias',   0.1 * jax.random.normal(k1, (W_NET,), jnp.float32)),
        ('layer1.weight', 0.1 * jax.random.normal(k2, (W_NET, IN1), jnp.float32)),
        ('layer1.bias',   0.1 * jax.random.normal(k3, (W_NET,), jnp.float32)),
    ])


if __name__ == "__main__":
    key = jax.random.PRNGKey(0)
    ks = jax.random.split(key, 12)
    hn_w2 = 0.02 * jax.random.normal(ks[4], (EMB_DIM, HN_FLAT), jnp.float32)
    weights = {
        'network_fn':   init_mlp_params(ks[0]),
        'network_fine': init_mlp_params(ks[1]),
        # weight matrices stored bf16 (halved HBM traffic, bf16 MXU); biases stay f32.
        'embed_w1': (0.02 * jax.random.normal(ks[2], (D_FLAT, EMB_DIM), jnp.float32)
                     ).astype(jnp.bfloat16),
        'embed_b1': 0.02 * jax.random.normal(ks[3], (EMB_DIM,), jnp.float32),
        # hypernet weight pre-permuted once at init into the kernel's streaming layout.
        'hn_w2q':   pack_hn_w2(hn_w2).astype(jnp.bfloat16),
        'hn_b2':    0.02 * jax.random.normal(ks[5], (HN_FLAT,), jnp.float32),
    }

    focal = 20.0
    K = jnp.array([[focal, 0., W / 2.], [0., focal, H / 2.], [0., 0., 1.]], jnp.float32)

    def make_poses(k, n):
        t = 0.1 * jax.random.normal(k, (n, 3), jnp.float32)
        poses = jnp.tile(jnp.eye(4, dtype=jnp.float32)[None], (n, 1, 1))
        poses = poses.at[:, :3, 3].set(t + jnp.array([0., 0., 2.], jnp.float32))
        return poses

    data_shot = {
        'images': jax.random.uniform(ks[6], (N_SUPPORT, H, W, 3), jnp.float32),
        'poses':  make_poses(ks[7], N_SUPPORT),
        'hwfk':   (H, W, focal, K),
    }
    data_query = {
        'images': jax.random.uniform(ks[8], (N_QUERY, H, W, 3), jnp.float32),
        'poses':  make_poses(ks[9], N_QUERY),
        'hwfk':   (H, W, focal, K),
        'chunks': 1024,
    }

    epoch = LMDA_STEPS   # -> lmda = 1 : pure hypernetwork update branch
    rgb, target_s, planes, occ = hypermaml_forward(data_shot, data_query, epoch, weights)
    jax.block_until_ready((rgb, target_s, planes, occ))

    assert rgb.shape == (N_RAND, 3)
    assert target_s.shape == (N_RAND, 3)
    assert planes.shape == (IMG2EMBED + 2 + 2 + 1, 3, H, W)
    assert bool(jnp.all(jnp.isfinite(rgb))) and bool(jnp.all(jnp.isfinite(planes)))
    print("KERNEL_OK")
</pallas_src>

<mosaic_0001>
module attributes {stable_mosaic.version = 11 : i64} {
  func.func @fused_hypermaml_kernel(%arg0: i32, %arg1: memref<8x768xf32, #tpu.memory_space<vmem>>, %arg2: memref<768x128xbf16, #tpu.memory_space<vmem>>, %arg3: memref<1x128xf32, #tpu.memory_space<vmem>>, %arg4: memref<1024x128xbf16, #tpu.memory_space<vmem>>, %arg5: memref<8x128xf32, #tpu.memory_space<vmem>>, %arg6: memref<8x128xf32, #tpu.memory_space<vmem>>, %arg7: memref<8x128xf32, #tpu.memory_space<vmem>>, %arg8: memref<64x128xf32, #tpu.memory_space<vmem>>, %arg9: memref<32x128xf32, #tpu.memory_space<vmem>>, %arg10: memref<32x128xf32, #tpu.memory_space<vmem>>, %arg11: memref<8x768xf32, #tpu.memory_space<vmem>>, %arg12: memref<64x128xf32, #tpu.memory_space<vmem>>, %arg13: memref<8x1024xbf16, #tpu.memory_space<vmem>>) attributes {dimension_semantics = [#tpu.dimension_semantics<arbitrary>], iteration_bounds = array<i64: 4>, scalar_prefetch = 0 : i64, scratch_operands = 1 : i64, tpu.core_type = #tpu.core_type<tc>, window_params = [{pipeline_mode = #tpu.pipeline_mode<synchronous>, transform_indices = @transform_0, window_bounds = array<i64: 8, 768>}, {pipeline_mode = #tpu.pipeline_mode<synchronous>, transform_indices = @transform_1, window_bounds = array<i64: 768, 128>}, {pipeline_mode = #tpu.pipeline_mode<synchronous>, transform_indices = @transform_2, window_bounds = array<i64: 1, 128>}, {transform_indices = @transform_3, window_bounds = array<i64: 1024, 128>}, {transform_indices = @transform_4, window_bounds = array<i64: 8, 128>}, {transform_indices = @transform_5, window_bounds = array<i64: 8, 128>}, {transform_indices = @transform_6, window_bounds = array<i64: 8, 128>}, {pipeline_mode = #tpu.pipeline_mode<synchronous>, transform_indices = @transform_7, window_bounds = array<i64: 64, 128>}, {pipeline_mode = #tpu.pipeline_mode<synchronous>, transform_indices = @transform_8, window_bounds = array<i64: 32, 128>}, {pipeline_mode = #tpu.pipeline_mode<synchronous>, transform_indices = @transform_9, window_bounds = array<i64: 32, 128>}, {pipeline_mode = #tpu.pipeline_mode<synchronous>, transform_indices = @transform_10, window_bounds = array<i64: 8, 768>}, {pipeline_mode = #tpu.pipeline_mode<synchronous>, transform_indices = @transform_11, window_bounds = array<i64: 64, 128>}]} {
    %c0_i32 = arith.constant 0 : i32
    %0 = arith.cmpi eq, %arg0, %c0_i32 : i32
    %1 = arith.extui %0 : i1 to i32
    %c0_i32_0 = arith.constant 0 : i32
    %2 = arith.cmpi ne, %1, %c0_i32_0 : i32
    scf.if %2 {
      %c0_15 = arith.constant 0 : index
      %c0_16 = arith.constant 0 : index
      %25 = vector.load %arg1[%c0_15, %c0_16] : memref<8x768xf32, #tpu.memory_space<vmem>>, vector<8x768xf32>
      %26 = arith.truncf %25 : vector<8x768xf32> to vector<8x768xbf16>
      %c0_17 = arith.constant 0 : index
      %c0_18 = arith.constant 0 : index
      %27 = vector.load %arg2[%c0_17, %c0_18] : memref<768x128xbf16, #tpu.memory_space<vmem>>, vector<768x128xbf16>
      %cst_19 = arith.constant dense<0.000000e+00> : vector<8x128xf32>
      %28 = tpu.matmul %26, %27, %cst_19 {dimension_numbers = #tpu.dot_dimension_numbers<[1], [0], [0], [1], [0, 0, 1, 1], [], []>} : vector<8x768xbf16>, vector<768x128xbf16>, vector<8x128xf32> -> vector<8x128xf32>
      %c0_20 = arith.constant 0 : index
      %c0_21 = arith.constant 0 : index
      %29 = vector.load %arg3[%c0_20, %c0_21] : memref<1x128xf32, #tpu.memory_space<vmem>>, vector<1x128xf32>
      %30 = vector.broadcast %29 : vector<1x128xf32> to vector<8x128xf32>
      %31 = arith.addf %28, %30 : vector<8x128xf32>
      %cst_22 = arith.constant 0.000000e+00 : f32
      %32 = vector.broadcast %cst_22 : f32 to vector<8x128xf32>
      %33 = arith.maximumf %31, %32 : vector<8x128xf32>
      %34 = tpu.iota {dimensions = array<i32: 0>} : vector<8x128xi32>
      %c7_i32 = arith.constant 7 : i32
      %35 = vector.broadcast %c7_i32 : i32 to vector<8x128xi32>
      %36 = arith.cmpi slt, %34, %35 : vector<8x128xi32>
      %cst_23 = arith.constant 0.000000e+00 : f32
      %37 = vector.broadcast %cst_23 : f32 to vector<8x128xf32>
      %38 = arith.select %36, %33, %37 : vector<8x128xi1>, vector<8x128xf32>
      %cst_24 = arith.constant dense<0.000000e+00> : vector<128xf32>
      %39 = vector.multi_reduction <add>, %38, %cst_24 [0] : vector<8x128xf32> to vector<128xf32>
      %40 = vector.shape_cast %39 : vector<128xf32> to vector<1x128xf32>
      %cst_25 = arith.constant 0.142857149 : f32
      %41 = vector.broadcast %cst_25 : f32 to vector<1x128xf32>
      %42 = arith.mulf %40, %41 : vector<1x128xf32>
      %43 = vector.shape_cast %42 : vector<1x128xf32> to vector<1x128xf32>
      %44 = vector.broadcast %43 : vector<1x128xf32> to vector<8x128xf32>
      %45 = tpu.concatenate %44, %44, %44, %44, %44, %44, %44, %44 in 1 : vector<8x128xf32>, vector<8x128xf32>, vector<8x128xf32>, vector<8x128xf32>, vector<8x128xf32>, vector<8x128xf32>, vector<8x128xf32>, vector<8x128xf32> -> vector<8x1024xf32>
      %46 = tpu.iota {dimensions = array<i32: 0>} : vector<8x1024xi32>
      %47 = tpu.iota {dimensions = array<i32: 1>} : vector<8x1024xi32>
      %c128_i32 = arith.constant 128 : i32
      %48 = vector.broadcast %c128_i32 : i32 to vector<8x1024xi32>
      %49 = arith.muli %46, %48 : vector<8x1024xi32>
      %50 = arith.cmpi sge, %47, %49 : vector<8x1024xi32>
      %c1_i32 = arith.constant 1 : i32
      %51 = vector.broadcast %c1_i32 : i32 to vector<8x1024xi32>
      %52 = arith.addi %46, %51 : vector<8x1024xi32>
      %c128_i32_26 = arith.constant 128 : i32
      %53 = vector.broadcast %c128_i32_26 : i32 to vector<8x1024xi32>
      %54 = arith.muli %52, %53 : vector<8x1024xi32>
      %55 = arith.cmpi slt, %47, %54 : vector<8x1024xi32>
      %56 = arith.andi %50, %55 : vector<8x1024xi1>
      %cst_27 = arith.constant 0.000000e+00 : f32
      %57 = vector.broadcast %cst_27 : f32 to vector<8x1024xf32>
      %58 = arith.select %56, %45, %57 : vector<8x1024xi1>, vector<8x1024xf32>
      %59 = arith.truncf %58 : vector<8x1024xf32> to vector<8x1024xbf16>
      %c0_28 = arith.constant 0 : index
      %c0_29 = arith.constant 0 : index
      %60 = vector.load %arg13[%c0_28, %c0_29] : memref<8x1024xbf16, #tpu.memory_space<vmem>>, vector<8x1024xbf16>
      tpu.vector_store %arg13[%c0_28, %c0_29], %59 {strides = array<i32>} : memref<8x1024xbf16, #tpu.memory_space<vmem>>, vector<8x1024xbf16>,
      %cst_30 = arith.constant 5.000000e-01 : f32
      %61 = vector.broadcast %cst_30 : f32 to vector<8x768xf32>
      %62 = arith.mulf %61, %25 : vector<8x768xf32>
      %63 = math.tanh %62 : vector<8x768xf32>
      %c0_31 = arith.constant 0 : index
      %c0_32 = arith.constant 0 : index
      %64 = vector.load %arg11[%c0_31, %c0_32] : memref<8x768xf32, #tpu.memory_space<vmem>>, vector<8x768xf32>
      tpu.vector_store %arg11[%c0_31, %c0_32], %63 {strides = array<i32>} : memref<8x768xf32, #tpu.memory_space<vmem>>, vector<8x768xf32>,
    } else {
    }
    %c0 = arith.constant 0 : index
    %c0_1 = arith.constant 0 : index
    %3 = vector.load %arg13[%c0, %c0_1] : memref<8x1024xbf16, #tpu.memory_space<vmem>>, vector<8x1024xbf16>
    %c0_2 = arith.constant 0 : index
    %c0_3 = arith.constant 0 : index
    %4 = vector.load %arg4[%c0_2, %c0_3] : memref<1024x128xbf16, #tpu.memory_space<vmem>>, vector<1024x128xbf16>
    %cst = arith.constant dense<0.000000e+00> : vector<8x128xf32>
    %5 = tpu.matmul %3, %4, %cst {dimension_numbers = #tpu.dot_dimension_numbers<[1], [0], [0], [1], [0, 0, 1, 1], [], []>} : vector<8x1024xbf16>, vector<1024x128xbf16>, vector<8x128xf32> -> vector<8x128xf32>
    %c0_4 = arith.constant 0 : index
    %c0_5 = arith.constant 0 : index
    %6 = vector.load %arg5[%c0_4, %c0_5] : memref<8x128xf32, #tpu.memory_space<vmem>>, vector<8x128xf32>
    %7 = arith.addf %5, %6 : vector<8x128xf32>
    %c8_i32 = arith.constant 8 : i32
    %8 = arith.muli %arg0, %c8_i32 : i32
    %9 = tpu.assume_multiple %8, 8 : i32
    %c0_6 = arith.constant 0 : index
    %c0_7 = arith.constant 0 : index
    %10 = vector.load %arg6[%c0_6, %c0_7] : memref<8x128xf32, #tpu.memory_space<vmem>>, vector<8x128xf32>
    %cst_8 = arith.constant 1.000000e+00 : f32
    %11 = vector.broadcast %cst_8 : f32 to vector<8x128xf32>
    %12 = arith.mulf %11, %7 : vector<8x128xf32>
    %13 = arith.addf %10, %12 : vector<8x128xf32>
    %14 = arith.index_cast %9 : i32 to index
    %c0_9 = arith.constant 0 : index
    %15 = vector.load %arg9[%14, %c0_9] : memref<32x128xf32, #tpu.memory_space<vmem>>, vector<8x128xf32>
    tpu.vector_store %arg9[%14, %c0_9], %13 {strides = array<i32>} : memref<32x128xf32, #tpu.memory_space<vmem>>, vector<8x128xf32>,
    %c0_10 = arith.constant 0 : index
    %c0_11 = arith.constant 0 : index
    %16 = vector.load %arg7[%c0_10, %c0_11] : memref<8x128xf32, #tpu.memory_space<vmem>>, vector<8x128xf32>
    %cst_12 = arith.constant 1.000000e+00 : f32
    %17 = vector.broadcast %cst_12 : f32 to vector<8x128xf32>
    %18 = arith.mulf %17, %7 : vector<8x128xf32>
    %19 = arith.addf %16, %18 : vector<8x128xf32>
    %20 = arith.index_cast %9 : i32 to index
    %c0_13 = arith.constant 0 : index
    %21 = vector.load %arg10[%20, %c0_13] : memref<32x128xf32, #tpu.memory_space<vmem>>, vector<8x128xf32>
    tpu.vector_store %arg10[%20, %c0_13], %19 {strides = array<i32>} : memref<32x128xf32, #tpu.memory_space<vmem>>, vector<8x128xf32>,
    %c3_i32 = arith.constant 3 : i32
    %22 = arith.cmpi eq, %arg0, %c3_i32 : i32
    %23 = arith.extui %22 : i1 to i32
    %c0_i32_14 = arith.constant 0 : i32
    %24 = arith.cmpi ne, %23, %c0_i32_14 : i32
    scf.if %24 {
      %c0_15 = arith.constant 0 : index
      %c0_16 = arith.constant 0 : index
      %25 = vector.load %arg9[%c0_15, %c0_16] : memref<32x128xf32, #tpu.memory_space<vmem>>, vector<32x128xf32>
      %c0_17 = arith.constant 0 : index
      %c0_18 = arith.constant 0 : index
      %26 = vector.load %arg10[%c0_17, %c0_18] : memref<32x128xf32, #tpu.memory_space<vmem>>, vector<32x128xf32>
      %27 = tpu.iota {dimensions = array<i32: 1>} : vector<32x128xi32>
      %28 = tpu.iota {dimensions = array<i32: 0>} : vector<32x128xi32>
      %c16_i32 = arith.constant 16 : i32
      %29 = vector.broadcast %c16_i32 : i32 to vector<32x128xi32>
      %30 = arith.cmpi eq, %27, %29 : vector<32x128xi32>
      %31 = arith.select %30, %26, %25 : vector<32x128xi1>, vector<32x128xf32>
      %c0_19 = arith.constant 0 : index
      %c0_20 = arith.constant 0 : index
      %32 = vector.load %arg8[%c0_19, %c0_20] : memref<64x128xf32, #tpu.memory_space<vmem>>, vector<64x128xf32>
      %cst_21 = arith.constant dense<0.000000e+00> : vector<64x32xf32>
      %33 = tpu.matmul %32, %31, %cst_21 {dimension_numbers = #tpu.dot_dimension_numbers<[1], [1], [0], [0], [0, 0, 1, 0], [], []>} : vector<64x128xf32>, vector<32x128xf32>, vector<64x32xf32> -> vector<64x32xf32>
      %cst_22 = arith.constant 0.000000e+00 : f32
      %34 = vector.broadcast %cst_22 : f32 to vector<64x32xf32>
      %35 = arith.maximumf %33, %34 : vector<64x32xf32>
      %c16_i32_23 = arith.constant 16 : i32
      %36 = vector.broadcast %c16_i32_23 : i32 to vector<32x128xi32>
      %37 = arith.addi %28, %36 : vector<32x128xi32>
      %38 = arith.cmpi eq, %27, %37 : vector<32x128xi32>
      %39 = arith.extui %38 : vector<32x128xi1> to vector<32x128xi32>
      %40 = arith.sitofp %39 : vector<32x128xi32> to vector<32x128xf32>
      %cst_24 = arith.constant dense<0.000000e+00> : vector<64x128xf32>
      %41 = tpu.matmul %35, %40, %cst_24 {dimension_numbers = #tpu.dot_dimension_numbers<[1], [0], [0], [1], [0, 0, 1, 1], [], []>} : vector<64x32xf32>, vector<32x128xf32>, vector<64x128xf32> -> vector<64x128xf32>
      %42 = tpu.iota {dimensions = array<i32: 1>} : vector<64x128xi32>
      %c48_i32 = arith.constant 48 : i32
      %43 = vector.broadcast %c48_i32 : i32 to vector<64x128xi32>
      %44 = arith.cmpi eq, %42, %43 : vector<64x128xi32>
      %45 = arith.extui %44 : vector<64x128xi1> to vector<64x128xi32>
      %46 = arith.sitofp %45 : vector<64x128xi32> to vector<64x128xf32>
      %47 = arith.addf %41, %46 : vector<64x128xf32>
      %c48_i32_25 = arith.constant 48 : i32
      %48 = vector.broadcast %c48_i32_25 : i32 to vector<32x128xi32>
      %49 = arith.cmpi eq, %27, %48 : vector<32x128xi32>
      %50 = arith.select %49, %26, %25 : vector<32x128xi1>, vector<32x128xf32>
      %cst_26 = arith.constant 0.000000e+00 : f32
      %51 = vector.broadcast %cst_26 : f32 to vector<96x128xf32>
      %52 = tpu.concatenate %50, %51 in 0 : vector<32x128xf32>, vector<96x128xf32> -> vector<128x128xf32>
      %cst_27 = arith.constant dense<0.000000e+00> : vector<64x128xf32>
      %53 = tpu.matmul %47, %52, %cst_27 {dimension_numbers = #tpu.dot_dimension_numbers<[1], [1], [0], [0], [0, 0, 1, 0], [], []>} : vector<64x128xf32>, vector<128x128xf32>, vector<64x128xf32> -> vector<64x128xf32>
      %54 = arith.negf %53 : vector<64x128xf32>
      %55 = math.exp %54 : vector<64x128xf32>
      %cst_28 = arith.constant 1.000000e+00 : f32
      %56 = vector.broadcast %cst_28 : f32 to vector<64x128xf32>
      %57 = arith.addf %56, %55 : vector<64x128xf32>
      %58 = arith.divf %56, %57 : vector<64x128xf32>
      %c0_29 = arith.constant 0 : index
      %c0_30 = arith.constant 0 : index
      %59 = vector.load %arg12[%c0_29, %c0_30] : memref<64x128xf32, #tpu.memory_space<vmem>>, vector<64x128xf32>
      tpu.vector_store %arg12[%c0_29, %c0_30], %58 {strides = array<i32>} : memref<64x128xf32, #tpu.memory_space<vmem>>, vector<64x128xf32>,
    } else {
    }
    return
  }
  func.func @transform_0(%arg0: i32) -> (i32, i32) {
    %c0_i32 = arith.constant 0 : i32
    %c0_i32_0 = arith.constant 0 : i32
    %c0_i32_1 = arith.constant 0 : i32
    return %c0_i32, %c0_i32_0 : i32, i32
  }
  func.func @transform_1(%arg0: i32) -> (i32, i32) {
    %c0_i32 = arith.constant 0 : i32
    %c0_i32_0 = arith.constant 0 : i32
    %c0_i32_1 = arith.constant 0 : i32
    return %c0_i32, %c0_i32_0 : i32, i32
  }
  func.func @transform_2(%arg0: i32) -> (i32, i32) {
    %c0_i32 = arith.constant 0 : i32
    %c0_i32_0 = arith.constant 0 : i32
    %c0_i32_1 = arith.constant 0 : i32
    return %c0_i32, %c0_i32_0 : i32, i32
  }
  func.func @transform_3(%arg0: i32) -> (i32, i32) {
    %c0_i32 = arith.constant 0 : i32
    %c0_i32_0 = arith.constant 0 : i32
    return %arg0, %c0_i32 : i32, i32
  }
  func.func @transform_4(%arg0: i32) -> (i32, i32) {
    %c0_i32 = arith.constant 0 : i32
    %c0_i32_0 = arith.constant 0 : i32
    return %arg0, %c0_i32 : i32, i32
  }
  func.func @transform_5(%arg0: i32) -> (i32, i32) {
    %c0_i32 = arith.constant 0 : i32
    %c0_i32_0 = arith.constant 0 : i32
    return %arg0, %c0_i32 : i32, i32
  }
  func.func @transform_6(%arg0: i32) -> (i32, i32) {
    %c0_i32 = arith.constant 0 : i32
    %c0_i32_0 = arith.constant 0 : i32
    return %arg0, %c0_i32 : i32, i32
  }
  func.func @transform_7(%arg0: i32) -> (i32, i32) {
    %c0_i32 = arith.constant 0 : i32
    %c0_i32_0 = arith.constant 0 : i32
    %c0_i32_1 = arith.constant 0 : i32
    return %c0_i32, %c0_i32_0 : i32, i32
  }
  func.func @transform_8(%arg0: i32) -> (i32, i32) {
    %c0_i32 = arith.constant 0 : i32
    %c0_i32_0 = arith.constant 0 : i32
    %c0_i32_1 = arith.constant 0 : i32
    return %c0_i32, %c0_i32_0 : i32, i32
  }
  func.func @transform_9(%arg0: i32) -> (i32, i32) {
    %c0_i32 = arith.constant 0 : i32
    %c0_i32_0 = arith.constant 0 : i32
    %c0_i32_1 = arith.constant 0 : i32
    return %c0_i32, %c0_i32_0 : i32, i32
  }
  func.func @transform_10(%arg0: i32) -> (i32, i32) {
    %c0_i32 = arith.constant 0 : i32
    %c0_i32_0 = arith.constant 0 : i32
    %c0_i32_1 = arith.constant 0 : i32
    return %c0_i32, %c0_i32_0 : i32, i32
  }
  func.func @transform_11(%arg0: i32) -> (i32, i32) {
    %c0_i32 = arith.constant 0 : i32
    %c0_i32_0 = arith.constant 0 : i32
    %c0_i32_1 = arith.constant 0 : i32
    return %c0_i32, %c0_i32_0 : i32, i32
  }
}

</mosaic_0001>

<bundles_post_ra>
// kernel: tile.5
= control target key start
LH: loop header
LB: loop body
LE: loop exit
PB: predicated region body
PF: predicated region fallthrough
CT: control target
= control target key end

     0   :  { %vm43_vm0 = vcmask 916480   ;;  %vm22_vm1 = vcmask 785408   ;;  %s72_s10 = smov 16   ;;  %vm13_vm2 = vcmask 130048   ;;  %vm36_vm3 = vcmask 1047808   ;;  %s92_s0 = inlined_call_operand.vmem [shape: f32[3,144], index: 0, kind: input, shape index: {}]   ;;  %s93_s1 = inlined_call_operand.vmem [shape: f32[432], index: 1, kind: output, shape index: {}]  }
   0x1   :  { %v9_v0 = vld [vmem:[%s92_s0] sm:$0xf]  ;;  %v68_v1 = vld [vmem:[%s92_s0 + $0x4] sm:$0xf]  ;;  %s71_s0 = smov 32   ;;  %vm50_vm4 = vcmask 261248  }
   0x2   :  { %10 = vst [vmem:[#allocation1] sm:$0xf] %v9_v0  ;;  %8 = vst [vmem:[#allocation1 + $0x8] sm:$0xf] %v68_v1  ;;  %vm26_vm5 = vcmask 261120   ;;  %vm29_vm6 = vcmask 392448  }
   0x3   :  { %vm57_vm7 = vcmask 1047680  }
   0x9   :  { %v33_v2 = vld [vmem:[#allocation1 + $0x2] sm:$0x1]   ;;  %v40_v3 = vld [vmem:[#allocation1 + $0x1] sm:$0x1]   ;;  %v42_v4 = vld [vmem:[#allocation1 + $0x9] sm:$0x1]  }
   0xa   :  { %34 = vrot.lane.b32.xlu0 %v33_v2, %s71_s0  ;;  %v44_v5 = vsel %vm43_vm0, %v42_v4, %v40_v3  ;;  %v19_v6 = vld [vmem:[#allocation1 + $0x2] sm:$0x1]   ;;  %v21_v7 = vld [vmem:[#allocation1 + $0xa] sm:$0x1]   ;;  %v16_v9 = vld [vmem:[#allocation1] sm:$0x1]  }
   0xb   :  { %45 = vrot.lane.b32.xlu1 %v44_v5, %s72_s10  ;;  %v23_v8 = vsel %vm22_vm1, %v21_v7, %v19_v6  ;;  %v12_v10 = vld [vmem:[#allocation1 + $0x8] sm:$0x1]   ;;  %v54_v11 = vld [vmem:[#allocation1 + $0x1] sm:$0x1]   ;;  %17 = vst [vmem:[#allocation0] sm:$0x1] %v16_v9  }
   0xc   :  { %15 = vst.msk [vmem:[#allocation0 + $0x1] sm:$0x1] %vm13_vm2, %v12_v10  }
   0xe   :  { %24 = vrot.lane.b32.xlu0 %v23_v8, %s71_s0 }
   0xf   :  { %55 = vrot.lane.b32.xlu1 %v54_v11, %s72_s10 }
  0x7c   :  { %v35_v12 = vpop.permute.xlu0 %34  }
  0x7d   :  { %38 = vst.msk [vmem:[#allocation0 + $0x2] sm:$0x1] %vm36_vm3, %v35_v12   ;;  %v46_v13 = vpop.permute.xlu1 %45  }
  0x7e   :  { %49 = vst.msk [vmem:[#allocation0 + $0x2] sm:$0x1] %vm13_vm2, %v46_v13  }
  0x7f   :  { %52 = vst.msk [vmem:[#allocation0 + $0x2] sm:$0x1] %vm50_vm4, %v46_v13  }
  0x80   :  { %v25_v14 = vpop.permute.xlu0 %24  }
  0x81   :  { %28 = vst.msk [vmem:[#allocation0 + $0x3] sm:$0x1] %vm26_vm5, %v25_v14   ;;  %v56_v15 = vpop.permute.xlu1 %55  }
  0x82   :  { %31 = vst.msk [vmem:[#allocation0 + $0x3] sm:$0x1] %vm29_vm6, %v25_v14  }
  0x83   :  { %59 = vst.msk [vmem:[#allocation0 + $0x1] sm:$0x1] %vm57_vm7, %v56_v15  }
  0x8a   :  { %v64_v16 = vld [vmem:[#allocation0] sm:$0xf] }
  0x8b   :  { %67 = vst [vmem:[%s93_s1] sm:$0xf] %v64_v16 }

// kernel: tile.6
= control target key start
LH: loop header
LB: loop body
LE: loop exit
PB: predicated region body
PF: predicated region fallthrough
CT: control target
= control target key end

     0   :  { %s58_s0 = inlined_call_operand.vmem [shape: f32[432], index: 0, kind: input, shape index: {}]   ;;  %s59_s1 = inlined_call_operand.vmem [shape: f32[2,432], index: 1, kind: output, shape index: {}]  }
   0x1   :  { %v4_v0 = vld [vmem:[%s58_s0] ss:$0 sm:$0xff]  ;;  %v18_v1 = vld [vmem:[%s58_s0 + $0x1] ss:$0 sm:$0xff]  ;;  %v20_v2 = vld [vmem:[%s58_s0 + $0x2] ss:$0 sm:$0xff] }
   0x2   :  { %5 = vst [vmem:[%s59_s1] sm:$0x3] %v4_v0  ;;  %19 = vst [vmem:[%s59_s1 + $0x2] sm:$0x3] %v18_v1  ;;  %v22_v3 = vld [vmem:[%s58_s0 + $0x3] ss:$0 sm:$0xff] }
   0x3   :  { %21 = vst [vmem:[%s59_s1 + $0x4] sm:$0x3] %v20_v2  ;;  %23 = vst [vmem:[%s59_s1 + $0x6] sm:$0x3] %v22_v3 }

// kernel: tile.7
= control target key start
LH: loop header
LB: loop body
LE: loop exit
PB: predicated region body
PF: predicated region fallthrough
CT: control target
= control target key end

     0   :  { %vm32_vm0 = vcmask 654336   ;;  %vm23_vm1 = vcmask 392192   ;;  %s59_s17 = smov 48   ;;  %vm39_vm2 = vcmask 785792   ;;  %vm46_vm3 = vcmask 1047936   ;;  %s97_s0 = inlined_call_operand.vmem [shape: f32[2,432], index: 0, kind: input, shape index: {}]   ;;  %s98_s1 = inlined_call_operand.vmem [shape: f32[864], index: 1, kind: output, shape index: {}]  }
   0x1   :  { %v51_v0 = vld [vmem:[%s97_s0 + $0x6] sm:$0x3]  ;;  %v52_v1 = vld [vmem:[%s97_s0 + $0x4] sm:$0x3]  ;;  %v53_v2 = vld [vmem:[%s97_s0 + $0x2] sm:$0x3] }
   0x2   :  { %9 = vst [vmem:[#allocation0 + $0x18] sm:$0x3] %v51_v0  ;;  %14 = vst [vmem:[#allocation0 + $0x10] sm:$0x3] %v52_v1  ;;  %v19_v3 = vld [vmem:[%s97_s0] sm:$0x3] }
   0x3   :  { %18 = vst [vmem:[#allocation0 + $0x8] sm:$0x3] %v53_v2  ;;  %20 = vst [vmem:[#allocation0] sm:$0x3] %v19_v3 }
   0x9   :  { %v31_v4 = vld [vmem:[#allocation0 + $0x19] sm:$0x1]   ;;  %v22_v5 = vld [vmem:[#allocation0 + $0x18] sm:$0x1]  }
   0xa   :  { %v29_v6 = vld [vmem:[#allocation0 + $0x1] ss:$8 sm:$0x7]   ;;  %v26_v7 = vld [vmem:[#allocation0] ss:$8 sm:$0x7]  }
   0xb   :  { %54 = vst.msk [vmem:[%s98_s1 + $0x3] sm:$0x1] %vm23_vm1, %v22_v5   ;;  %v33_v8 = vsel %vm32_vm0, %v31_v4, %v29_v6  ;;  %27 = vst [vmem:[%s98_s1] sm:$0x7] %v26_v7   ;;  %v43_v9 = vld [vmem:[#allocation0 + $0x1] ss:$8 sm:$0x7]  }
   0xc   :  { %34 = vrot.lane.b32.xlu0 %v33_v8, %s59_s17 }
  0x10   :  { %44 = vrot.lane.b32.xlu0 %v43_v9, %s59_s17 }
  0x7e   :  { %v35_v10 = vpop.permute.xlu0 %34  }
  0x7f   :  { %55 = vst.msk [vmem:[%s98_s1 + $0x4] sm:$0x7] %vm23_vm1, %v35_v10  }
  0x80   :  { %56 = vst.msk [vmem:[%s98_s1 + $0x6] sm:$0x1] %vm39_vm2, %v35_v10  }
  0x82   :  { %v45_v11 = vpop.permute.xlu0 %44  }
  0x83   :  { %57 = vst.msk [vmem:[%s98_s1 + $0x3] sm:$0x7] %vm46_vm3, %v45_v11  }

// kernel: _forward_impl.1
= control target key start
LH: loop header
LB: loop body
LE: loop exit
PB: predicated region body
PF: predicated region fallthrough
CT: control target
= control target key end

     0   :  { %17 = vsyncpa [#allocation4], 0  ;;  %s3546_s0 = inlined_call_operand.vmem [shape: f32[8,768], index: 0, kind: input, shape index: {}]   ;;  %s3547_s1 = inlined_call_operand.vmem [shape: bf16[768,128], index: 1, kind: input, shape index: {}]   ;;  %s3548_s2 = inlined_call_operand.vmem [shape: f32[1,128], index: 2, kind: input, shape index: {}]   ;;  %s3549_s3 = inlined_call_operand.vmem [shape: bf16[4096,128], index: 3, kind: input, shape index: {}]   ;;  %s3550_s4 = inlined_call_operand.vmem [shape: f32[32,128], index: 4, kind: input, shape index: {}]   ;;  %s3551_s5 = inlined_call_operand.vmem [shape: f32[32,128], index: 5, kind: input, shape index: {}]   ;;  %s3552_s6 = inlined_call_operand.vmem [shape: f32[32,128], index: 6, kind: input, shape index: {}]   ;;  %s3553_s7 = inlined_call_operand.vmem [shape: f32[64,128], index: 7, kind: input, shape index: {}]   ;;  %s3554_s8 = inlined_call_operand.hbm [shape: f32[32,128], index: 8, kind: output, shape index: {0}]   ;;  %s3555_s9 = inlined_call_operand.hbm [shape: f32[32,128], index: 9, kind: output, shape index: {1}]   ;;  %s3556_s10 = inlined_call_operand.vmem [shape: f32[8,768], index: 10, kind: output, shape index: {2}]   ;;  %s3557_s11 = inlined_call_operand.vmem [shape: f32[64,128], index: 11, kind: output, shape index: {3}]  }
   0x1   :  { %18 = vsyncpa [#allocation6], 0  ;;  %s3103_s17 = smov 0  }
   0x2 LB: > { %s3109_s18 = sadd.s32 4294967295, %s3035_s17   ;;  %p2356_p0 = scmp.ge.s32.totalorder %s3035_s17, 1  ;;  %s3035_s17 = sphi %s3103_s17, %s24_s17  }
   0x3   : > { %p354_p1 = scmp.lt.s32.totalorder %s3035_s17, 5 }
   0x5   : > { %p355_p2 = pnand %p2356_p0, %p354_p1 }
   0x6   : > { %s2357_s19 = sshll.u32 (!%p355_p2), %s3109_s18, 7  ;;  %p407_p3 = scmp.lt.s32.totalorder (!%p355_p2), %s3109_s18, 3 }
   0x7   : > { %358 = sbr.rel (%p355_p2) target bundleno = 1267 (0x4f3), region = 52  ;;  %p402_p4 = scmp.lt.s32.totalorder (!%p355_p2), %s2357_s19, 511 }
   0x8   : > { %p2362_p5 = scmp.ne.s32.totalorder (!%p355_p2), %s3109_s18, 0 }
   0xc   : > { %s408_s20 = scalar_select %p407_p3, %s3109_s18, 3 }
   0xd   : > { %s3572_s19 = smov (!%p402_p4, %s2357_s19), 511  ;;  %423 = sbr.rel (%p2362_p5) target bundleno = 305 (0x131), region = 56 }
   0xe   : > { %s3116_s21 = sshll.u32 %s408_s20, 3  ;;  %s2358_s22 = sshll.u32 %s3572_s19, 2 }
   0xf   : > { %s410_s25 = scalar_lea.vmem %s3550_s4, %s3116_s21  ;;  %s3125_s28 = scalar_lea.vmem %s3549_s3, %s2358_s22 }
  0x10   : > { %s414_s12 = scalar_lea.vmem %s3551_s5, %s3116_s21  ;;  %s418_s15 = scalar_lea.vmem %s3552_s6, %s3116_s21 }
  0x12   : > { %v2809_v0 = vld [vmem:[%s3547_s1 + $0x78] sm:$0xff]   ;;  %v2813_v4 = vld [vmem:[%s3547_s1 + $0x70] sm:$0xff]   ;;  %v2817_v8 = vld [vmem:[%s3547_s1 + $0x68] sm:$0xff]  }
  0x13   : > { %v2810_v1 = vld [vmem:[%s3547_s1 + $0x38] sm:$0xff]   ;;  %2525 = vmatprep.subr.bf16.mxu0 %v2809_v0  ;;  %v2814_v5 = vld [vmem:[%s3547_s1 + $0x30] sm:$0xff]   ;;  %v2818_v9 = vld [vmem:[%s3547_s1 + $0x28] sm:$0xff]  }
  0x14   : > { %v2811_v2 = vld [vmem:[%s3547_s1 + $0xf8] sm:$0xff]   ;;  %2526 = vmatpush3.bf16.msra.mxu0 %v2810_v1  ;;  %v2815_v6 = vld [vmem:[%s3547_s1 + $0xf0] sm:$0xff]   ;;  %v2819_v10 = vld [vmem:[%s3547_s1 + $0xe8] sm:$0xff]  }
  0x15   : > { %v2812_v3 = vld [vmem:[%s3547_s1 + $0xb8] sm:$0xff]   ;;  %2547 = vmatprep.subr.bf16.mxu1 %v2811_v2  ;;  %2527 = vmatprep.subr.bf16.mxu0 %v2813_v4  ;;  %v2816_v7 = vld [vmem:[%s3547_s1 + $0xb0] sm:$0xff]   ;;  %v2820_v11 = vld [vmem:[%s3547_s1 + $0xa8] sm:$0xff]  }
  0x16   : > { %2548 = vmatpush3.bf16.msra.mxu1 %v2812_v3  ;;  %v2821_v12 = vld [vmem:[%s3547_s1 + $0x60] sm:$0xff]   ;;  %v2825_v16 = vld [vmem:[%s3547_s1 + $0x58] sm:$0xff]   ;;  %v2829_v20 = vld [vmem:[%s3547_s1 + $0x50] sm:$0xff]  }
  0x17   : > { %2549 = vmatprep.subr.bf16.mxu1 %v2815_v6  ;;  %v2822_v13 = vld [vmem:[%s3547_s1 + $0x20] sm:$0xff]   ;;  %v2826_v17 = vld [vmem:[%s3547_s1 + $0x18] sm:$0xff]   ;;  %v2830_v21 = vld [vmem:[%s3547_s1 + $0x10] sm:$0xff]  }
  0x18   : > { %2528 = vmatpush3.bf16.msra.mxu0 %v2814_v5  ;;  %v2823_v14 = vld [vmem:[%s3547_s1 + $0xe0] sm:$0xff]   ;;  %v2827_v18 = vld [vmem:[%s3547_s1 + $0xd8] sm:$0xff]   ;;  %v2831_v22 = vld [vmem:[%s3547_s1 + $0xd0] sm:$0xff]  }
  0x19   : > { %2529 = vmatprep.subr.bf16.mxu0 %v2817_v8  ;;  %v2824_v15 = vld [vmem:[%s3547_s1 + $0xa0] sm:$0xff]   ;;  %v2828_v19 = vld [vmem:[%s3547_s1 + $0x98] sm:$0xff]   ;;  %v2832_v23 = vld [vmem:[%s3547_s1 + $0x90] sm:$0xff]  }
  0x1a   : > { %2550 = vmatpush3.bf16.msra.mxu1 %v2816_v7  ;;  %v2833_v24 = vld [vmem:[%s3547_s1 + $0x48] sm:$0xff]   ;;  %v2837_v28 = vld [vmem:[%s3547_s1 + $0x40] sm:$0xff]   ;;  %v2841_v38 = vld [vmem:[%s3547_s1 + $0x178] sm:$0xff]  }
  0x1b   : > { %2551 = vmatprep.subr.bf16.mxu1 %v2819_v10  ;;  %v2834_v25 = vld [vmem:[%s3547_s1 + $0x8] sm:$0xff]   ;;  %v2838_v29 = vld [vmem:[%s3547_s1] sm:$0xff]   ;;  %v427_v39 = vld [vmem:[%s3546_s0 + $0x18] sm:$0xff] }
  0x1c   : > { %2530 = vmatpush3.bf16.msra.mxu0 %v2818_v9  ;;  %v2835_v26 = vld [vmem:[%s3547_s1 + $0xc8] sm:$0xff]   ;;  %v2839_v30 = vld [vmem:[%s3547_s1 + $0xc0] sm:$0xff]   ;;  %v433_v40 = vpack.c.bf16 %v427_v39, %v427_v39  ;;  %v1042_v41 = vmul.f32 0.5, %v427_v39  ;;  %v2842_v42 = vld [vmem:[%s3547_s1 + $0x138] sm:$0xff]  }
  0x1d   : > { %2531 = vmatprep.subr.bf16.mxu0 %v2821_v12  ;;  %v2836_v27 = vld [vmem:[%s3547_s1 + $0x88] sm:$0xff]   ;;  %v2840_v34 = vld [vmem:[%s3547_s1 + $0x80] sm:$0xff]   ;;  %v426_v43 = vld [vmem:[%s3546_s0 + $0x10] sm:$0xff] }
  0x1e   : > { %2552 = vmatpush3.bf16.msra.mxu1 %v2820_v11  ;;  %v425_v31 = vld [vmem:[%s3546_s0 + $0x8] sm:$0xff]  ;;  %v424_v35 = vld [vmem:[%s3546_s0] sm:$0xff]  ;;  %899 = vmatprep.mubr.bf16.mxu1 %v433_v40  ;;  %v432_v44 = vpack.c.bf16 %v426_v43, %v426_v43  ;;  %v1041_v45 = vmul.f32 0.5, %v426_v43  ;;  %v2843_v46 = vld [vmem:[%s3547_s1 + $0x170] sm:$0xff]  }
  0x1f   : > { %2553 = vmatprep.subr.bf16.mxu1 %v2823_v14  ;;  %v431_v32 = vpack.c.bf16 %v425_v31, %v425_v31  ;;  %v1040_v33 = vmul.f32 0.5, %v425_v31  ;;  %v430_v36 = vpack.c.bf16 %v424_v35, %v424_v35  ;;  %v1039_v37 = vmul.f32 0.5, %v424_v35  ;;  %v2844_v47 = vld [vmem:[%s3547_s1 + $0x130] sm:$0xff]   ;;  %v2845_v48 = vld [vmem:[%s3547_s1 + $0x168] sm:$0xff]   ;;  %v2847_v50 = vld [vmem:[%s3547_s1 + $0x160] sm:$0xff]  }
  0x20   : > { %2532 = vmatpush3.bf16.msra.mxu0 %v2822_v13  ;;  %v2846_v49 = vld [vmem:[%s3547_s1 + $0x128] sm:$0xff]   ;;  %v2848_v51 = vld [vmem:[%s3547_s1 + $0x120] sm:$0xff]   ;;  %v2849_v52 = vld [vmem:[%s3547_s1 + $0x158] sm:$0xff]  }
  0x21   : > { %2533 = vmatprep.subr.bf16.mxu0 %v2825_v16  ;;  %859 = vmatprep.mubr.bf16.mxu0 %v431_v32  ;;  %2857 = vtanh.f32 %v1040_v33  ;;  %v2850_v55 = vld [vmem:[%s3547_s1 + $0x118] sm:$0xff]   ;;  %v2851_v57 = vld [vmem:[%s3547_s1 + $0x150] sm:$0xff]   ;;  %v429_v58 = vld [vmem:[%s3546_s0 + $0x28] sm:$0xff] }
  0x22   : > { %2554 = vmatpush3.bf16.msra.mxu1 %v2824_v15  ;;  %2859 = vtanh.f32 %v1039_v37  ;;  %v428_v59 = vld [vmem:[%s3546_s0 + $0x20] sm:$0xff]  ;;  %v435_v60 = vpack.c.bf16 %v429_v58, %v429_v58  ;;  %v1044_v61 = vmul.f32 0.5, %v429_v58  ;;  %v2852_v0 = vld [vmem:[%s3547_s1 + $0x110] sm:$0xff]   ;;  %v2853_v1 = vld [vmem:[%s3547_s1 + $0x148] sm:$0xff]  }
  0x23   : > { %2555 = vmatprep.subr.bf16.mxu1 %v2827_v18  ;;  %2861 = vtanh.f32 %v1042_v41  ;;  %v1043_v62 = vmul.f32 0.5, %v428_v59  ;;  %v2854_v2 = vld [vmem:[%s3547_s1 + $0x108] sm:$0xff]   ;;  %v2855_v3 = vld [vmem:[%s3547_s1 + $0x140] sm:$0xff]   ;;  %v434_v5 = vpack.c.bf16 %v428_v59, %v428_v59  ;;  %v948_v18 = vlaneseq }
  0x24   : > { %2534 = vmatpush3.bf16.msra.mxu0 %v2826_v17  ;;  %2863 = vtanh.f32 %v1041_v45  ;;  %v2856_v4 = vld [vmem:[%s3547_s1 + $0x100] sm:$0xff]   ;;  %v3558_v45 = vmov 0 }
  0x25   : > { %2535 = vmatprep.subr.bf16.mxu0 %v2829_v20  ;;  %2865 = vtanh.f32 %v1044_v61  ;;  %v2363_v17 = vld [vmem:[%s3548_s2] ss:$0 sm:$0xff] }
  0x26   : > { %2556 = vmatpush3.bf16.msra.mxu1 %v2828_v19  ;;  %2867 = vtanh.f32 %v1043_v62 }
  0x27   : > { %2557 = vmatprep.subr.bf16.mxu1 %v2831_v22 }
  0x28   : > { %2536 = vmatpush3.bf16.msra.mxu0 %v2830_v21 }
  0x29   : > { %2537 = vmatprep.subr.bf16.mxu0 %v2833_v24 }
  0x2a   : > { %2558 = vmatpush3.bf16.msra.mxu1 %v2832_v23  ;;  %v949_v23 = vshrl.u32 %v948_v18, 7 }
  0x2b   : > { %2559 = vmatprep.subr.bf16.mxu1 %v2835_v26 }
  0x2c   : > { %2538 = vmatpush3.bf16.msra.mxu0 %v2834_v25  ;;  %v977_v26 = vadd.s32 1, %v949_v23  ;;  %vm950_vm0 = vcmp.lt.s32.totalorder %v949_v23, 7  ;;  %v968_v32 = vmul.u32 128, %v949_v23 }
  0x2d   : > { %2539 = vmatprep.subr.bf16.mxu0 %v2837_v28 }
  0x2e   : > { %2560 = vmatpush3.bf16.msra.mxu1 %v2836_v27  ;;  %v2858_v53 = vpop.eup %2857  ;;  %v978_v33 = vmul.u32 128, %v977_v26 }
  0x2f   : > { %2561 = vmatprep.subr.bf16.mxu1 %v2839_v30  ;;  %v2860_v54 = vpop.eup %2859  ;;  %1052 = vst [vmem:[%s3556_s10 + $0x8] sm:$0xff] %v2858_v53 }
  0x30   : > { %2540 = vmatpush3.bf16.msra.mxu0 %v2838_v29  ;;  %v2862_v56 = vpop.eup %2861  ;;  %1051 = vst [vmem:[%s3556_s10] sm:$0xff] %v2860_v54  ;;  %v960_v29 = vand.u32 127, %v948_v18 }
  0x31   : > { %2569 = vmatprep.subr.bf16.mxu0 %v2841_v38  ;;  %1054 = vst [vmem:[%s3556_s10 + $0x18] sm:$0xff] %v2862_v56  ;;  %v2864_v63 = vpop.eup %2863 }
  0x32   : > { %2562 = vmatpush3.bf16.msra.mxu1 %v2840_v34  ;;  %1053 = vst [vmem:[%s3556_s10 + $0x10] sm:$0xff] %v2864_v63  ;;  %v2866_v6 = vpop.eup %2865  ;;  %v961_v35 = vadd.s32 128, %v960_v29  ;;  %v962_v37 = vadd.s32 256, %v960_v29  ;;  %v963_v38 = vadd.s32 384, %v960_v29  ;;  %v964_v40 = vadd.s32 512, %v960_v29 }
  0x33   : > { %860 = vmatmul.mubr.bf16.vlgmr.msra.gmra.mxu0 %v430_v36  ;;  %v2868_v7 = vpop.eup %2867  ;;  %1056 = vst [vmem:[%s3556_s10 + $0x28] sm:$0xff] %v2866_v6  ;;  %vm969_vm1 = vcmp.ge.s32.totalorder %v960_v29, %v968_v32  ;;  %vm979_vm2 = vcmp.lt.s32.totalorder %v960_v29, %v978_v33  ;;  %v965_v41 = vadd.s32 640, %v960_v29  ;;  %v966_v43 = vadd.s32 768, %v960_v29 }
  0x34   : > { %2570 = vmatpush3.bf16.msra.mxu0 %v2842_v42  ;;  %939 = vmatprep.mubr.bf16.mxu0 %v435_v60  ;;  %1055 = vst [vmem:[%s3556_s10 + $0x20] sm:$0xff] %v2868_v7  ;;  %vm970_vm3 = vcmp.ge.s32.totalorder %v961_v35, %v968_v32  ;;  %vm980_vm4 = vcmp.lt.s32.totalorder %v961_v35, %v978_v33  ;;  %vm3319_vm9 = vmand %vm969_vm1, %vm979_vm2 }
  0x35   : > { %900 = vmatmul.mubr.bf16.vlgmr.msra.gmra.mxu1 %v432_v44  ;;  %2571 = vmatprep.subr.bf16.mxu0 %v2843_v46  ;;  %vm971_vm5 = vcmp.ge.s32.totalorder %v962_v37, %v968_v32  ;;  %vm981_vm6 = vcmp.lt.s32.totalorder %v962_v37, %v978_v33  ;;  %v967_v44 = vadd.s32 896, %v960_v29  ;;  %vm972_vm7 = vcmp.ge.s32.totalorder %v963_v38, %v968_v32  ;;  %vm3323_vm12 = vmand %vm970_vm3, %vm980_vm4 }
  0x36   : > { %vm982_vm8 = vcmp.lt.s32.totalorder %v963_v38, %v978_v33  ;;  %v3559_v45 = vsel %vm3319_vm9, 4294967295, %v3558_v45  ;;  %vm973_vm10 = vcmp.ge.s32.totalorder %v964_v40, %v968_v32  ;;  %vm983_vm11 = vcmp.lt.s32.totalorder %v964_v40, %v978_v33  ;;  %vm3327_vm15 = vmand %vm971_vm5, %vm981_vm6 }
  0x37   : > { %vm974_vm13 = vcmp.ge.s32.totalorder %v965_v41, %v968_v32  ;;  %vm984_vm14 = vcmp.lt.s32.totalorder %v965_v41, %v978_v33  ;;  %vm985_vm1 = vcmp.lt.s32.totalorder %v966_v43, %v978_v33  ;;  %vm3331_vm2 = vmand %vm972_vm7, %vm982_vm8  ;;  %vm976_vm9 = vcmp.ge.s32.totalorder %v967_v44, %v968_v32 }
  0x38   : > { %2572 = vmatpush3.bf16.msra.mxu0 %v2844_v47  ;;  %v3560_v47 = vmov 0  ;;  %vm986_vm3 = vcmp.lt.s32.totalorder %v967_v44, %v978_v33  ;;  %vm3335_vm4 = vmand %vm973_vm10, %vm983_vm11 }
  0x39   : > { %2573 = vmatprep.subr.bf16.mxu0 %v2845_v48  ;;  %v3561_v47 = vsel %vm3323_vm12, 4294967295, %v3560_v47  ;;  %v3562_v48 = vmov 0  ;;  %vm992_vm12 = vmand %vm974_vm13, %vm984_vm14 }
  0x3a   : > { %v3563_v48 = vsel %vm3327_vm15, 4294967295, %v3562_v48  ;;  %vm994_vm6 = vmand %vm976_vm9, %vm986_vm3  ;;  %vm3568_vm15 = vnez %v3559_v45  ;;  %vm3569_vm7 = vnez %v3561_v47 }
  0x3b   : > { %vm3570_vm8 = vnez %v3563_v48 }
  0x3c   : > { %2574 = vmatpush3.bf16.msra.mxu0 %v2846_v49 }
  0x3d   : > { %2575 = vmatprep.subr.bf16.mxu0 %v2847_v50 }
  0x40   : > { %2576 = vmatpush3.bf16.msra.mxu0 %v2848_v51 }
  0x41   : > { %2577 = vmatprep.subr.bf16.mxu0 %v2849_v52 }
  0x44   : > { %2578 = vmatpush3.bf16.msra.mxu0 %v2850_v55 }
  0x45   : > { %2579 = vmatprep.subr.bf16.mxu0 %v2851_v57 }
  0x48   : > { %2580 = vmatpush3.bf16.msra.mxu0 %v2852_v0 }
  0x49   : > { %2581 = vmatprep.subr.bf16.mxu0 %v2853_v1 }
  0x4c   : > { %2582 = vmatpush3.bf16.msra.mxu0 %v2854_v2 }
  0x4d   : > { %2583 = vmatprep.subr.bf16.mxu0 %v2855_v3 }
  0x50   : > { %2584 = vmatpush3.bf16.msra.mxu0 %v2856_v4 }
  0x53   : > { %940 = vmatmul.mubr.bf16.vlgmr.msra.gmra.mxu0 %v434_v5 }
  0xf3   : > { %v2541_v8 = vpop.f32.mrf.mxu0 }
  0xf5   : > { %v2542_v9 = vpop.f32.mrf.mxu0  ;;  %v2563_v10 = vpop.f32.mrf.mxu1 }
  0xf6   : > { %v2543_v16 = vadd.f32 %v2542_v9, %v2541_v8 }
  0xf7   : > { %v2544_v11 = vpop.f32.mrf.mxu0  ;;  %v2564_v12 = vpop.f32.mrf.mxu1 }
  0xf8   : > { %v862_v19 = vadd.f32 %v2543_v16, %v2363_v17  ;;  %v2565_v20 = vadd.f32 %v2564_v12, %v2563_v10 }
  0xf9   : > { %v2545_v13 = vpop.f32.mrf.mxu0  ;;  %v2566_v14 = vpop.f32.mrf.mxu1 }
  0xfa   : > { %v902_v24 = vadd.f32 %v2565_v20, %v862_v19 }
  0xfb   : > { %v2567_v15 = vpop.f32.mrf.mxu1 }
 0x113   : > { %v2585_v21 = vpop.f32.mrf.mxu0 }
 0x115   : > { %v2586_v22 = vpop.f32.mrf.mxu0 }
 0x116   : > { %v2587_v25 = vadd.f32 %v2586_v22, %v2585_v21 }
 0x117   : > { %v2588_v27 = vpop.f32.mrf.mxu0 }
 0x118   : > { %v942_v28 = vadd.f32 %v2587_v25, %v902_v24 }
 0x119   : > { %v2589_v30 = vpop.f32.mrf.mxu0 }
 0x11a   : > { %v947_v31 = vmax.f32 %v942_v28, 0.0 }
 0x11c   : > { %v951_v34 = vsel %vm950_vm0, %v947_v31, 0.0  ;;  %vm975_vm0 = vcmp.ge.s32.totalorder %v966_v43, %v968_v32 }
 0x11d   : > { %v952_v36 = vrot.slane %v951_v34, 4  ;;  %vm993_vm5 = vmand %vm975_vm0, %vm985_vm1 }
 0x11f   : > { %v953_v39 = vadd.f32 %v952_v36, %v951_v34 }
 0x121   : > { %v954_v42 = vrot.slane %v953_v39, 2 }
 0x123   : > { %v955_v46 = vadd.f32 %v954_v42, %v953_v39 }
 0x125   : > { %v956_v49 = vrot.slane %v955_v46, 1 }
 0x127   : > { %v957_v52 = vadd.f32 %v956_v49, %v955_v46 }
 0x129   : > { %v958_v53 = vmul.f32 0.14285715, %v957_v52 }
 0x12b   : > { %v995_v54 = vsel %vm3568_vm15, %v958_v53, 0.0  ;;  %v996_v55 = vsel %vm3569_vm7, %v958_v53, 0.0  ;;  %v997_v56 = vsel %vm3570_vm8, %v958_v53, 0.0  ;;  %v998_v57 = vsel %vm3331_vm2, %v958_v53, 0.0 }
 0x12c   : > { %v999_v58 = vsel %vm3335_vm4, %v958_v53, 0.0  ;;  %v1000_v59 = vsel %vm992_vm12, %v958_v53, 0.0  ;;  %v1001_v60 = vsel %vm993_vm5, %v958_v53, 0.0  ;;  %v1002_v61 = vsel %vm994_vm6, %v958_v53, 0.0 }
 0x12d   : > { %v2521_v62 = vpack.c.bf16 %v996_v55, %v995_v54  ;;  %v2522_v63 = vpack.c.bf16 %v998_v57, %v997_v56  ;;  %v2523_v0 = vpack.c.bf16 %v1000_v59, %v999_v58  ;;  %v2524_v1 = vpack.c.bf16 %v1002_v61, %v1001_v60 }
 0x12f   : > { %1035 = vst [vmem:[#allocation2 + $0x10] sm:$0xff] %v2521_v62  ;;  %1036 = vst [vmem:[#allocation2] sm:$0xff] %v2522_v63 }
 0x130   : > { %1037 = vst [vmem:[#allocation2 + $0x18] sm:$0xff] %v2523_v0  ;;  %1038 = vst [vmem:[#allocation2 + $0x8] sm:$0xff] %v2524_v1 }
 0x131 PF: > { %v2869_v2 = vld [vmem:[%s3125_s28 + $0x78] sm:$0xff]   ;;  %v2873_v6 = vld [vmem:[%s3125_s28 + $0x70] sm:$0xff]   ;;  %v2877_v10 = vld [vmem:[%s3125_s28 + $0x68] sm:$0xff]   ;;  %s2488_s23 = sshll.u32 %s3109_s18, 3  ;;  %p2489_p6 = scmp.ne.s32.totalorder %s3109_s18, 3 }
 0x132   : > { %v2870_v3 = vld [vmem:[%s3125_s28 + $0xf8] sm:$0xff]   ;;  %2591 = vmatprep.subr.bf16.mxu0 %v2869_v2  ;;  %v2874_v7 = vld [vmem:[%s3125_s28 + $0xf0] sm:$0xff]   ;;  %v2878_v11 = vld [vmem:[%s3125_s28 + $0xe8] sm:$0xff]   ;;  %s1765_s27 = scalar_lea.vmem [#allocation3], %s2488_s23  ;;  %s1769_s29 = scalar_lea.vmem [#allocation5], %s2488_s23 }
 0x133   : > { %v2871_v4 = vld [vmem:[%s3125_s28 + $0x38] sm:$0xff]   ;;  %2613 = vmatprep.subr.bf16.mxu1 %v2870_v3  ;;  %v2875_v8 = vld [vmem:[%s3125_s28 + $0x30] sm:$0xff]   ;;  %v2879_v12 = vld [vmem:[%s3125_s28 + $0x28] sm:$0xff]  }
 0x134   : > { %v2872_v5 = vld [vmem:[%s3125_s28 + $0xb8] sm:$0xff]   ;;  %2592 = vmatpush3.bf16.msra.mxu0 %v2871_v4  ;;  %v2876_v9 = vld [vmem:[%s3125_s28 + $0xb0] sm:$0xff]   ;;  %v2880_v13 = vld [vmem:[%s3125_s28 + $0xa8] sm:$0xff]  }
 0x135   : > { %2614 = vmatpush3.bf16.msra.mxu1 %v2872_v5  ;;  %2593 = vmatprep.subr.bf16.mxu0 %v2873_v6  ;;  %v2881_v14 = vld [vmem:[%s3125_s28 + $0x60] sm:$0xff]   ;;  %v2885_v18 = vld [vmem:[%s3125_s28 + $0x58] sm:$0xff]   ;;  %v2889_v22 = vld [vmem:[%s3125_s28 + $0x50] sm:$0xff]  }
 0x136   : > { %2615 = vmatprep.subr.bf16.mxu1 %v2874_v7  ;;  %v2882_v15 = vld [vmem:[%s3125_s28 + $0xe0] sm:$0xff]   ;;  %v2886_v19 = vld [vmem:[%s3125_s28 + $0xd8] sm:$0xff]   ;;  %v2890_v23 = vld [vmem:[%s3125_s28 + $0xd0] sm:$0xff]  }
 0x137   : > { %v2883_v16 = vld [vmem:[%s3125_s28 + $0x20] sm:$0xff]   ;;  %v2887_v20 = vld [vmem:[%s3125_s28 + $0x18] sm:$0xff]   ;;  %v2891_v24 = vld [vmem:[%s3125_s28 + $0x10] sm:$0xff]  }
 0x138   : > { %2594 = vmatpush3.bf16.msra.mxu0 %v2875_v8  ;;  %v2884_v17 = vld [vmem:[%s3125_s28 + $0xa0] sm:$0xff]   ;;  %v2888_v21 = vld [vmem:[%s3125_s28 + $0x98] sm:$0xff]   ;;  %v2892_v25 = vld [vmem:[%s3125_s28 + $0x90] sm:$0xff]  }
 0x139   : > { %2616 = vmatpush3.bf16.msra.mxu1 %v2876_v9  ;;  %2595 = vmatprep.subr.bf16.mxu0 %v2877_v10  ;;  %v2893_v26 = vld [vmem:[%s3125_s28 + $0x48] sm:$0xff]   ;;  %v2897_v30 = vld [vmem:[%s3125_s28 + $0x40] sm:$0xff]   ;;  %v1057_v34 = vld [vmem:[#allocation2 + $0x10] sm:$0xff] }
 0x13a   : > { %2617 = vmatprep.subr.bf16.mxu1 %v2878_v11  ;;  %v2894_v27 = vld [vmem:[%s3125_s28 + $0xc8] sm:$0xff]   ;;  %v2898_v31 = vld [vmem:[%s3125_s28 + $0xc0] sm:$0xff]   ;;  %v2416_v36 = vcombine.low %v1057_v34, %v1057_v34  ;;  %v2417_v37 = vcombine.high %v1057_v34, %v1057_v34  ;;  %v2905_v40 = vld [vmem:[%s3125_s28 + $0x178] sm:$0xff]  }
 0x13b   : > { %v2895_v28 = vld [vmem:[%s3125_s28 + $0x8] sm:$0xff]   ;;  %v2899_v32 = vld [vmem:[%s3125_s28] sm:$0xff]   ;;  %v2906_v41 = vld [vmem:[%s3125_s28 + $0x1f8] sm:$0xff]  }
 0x13c   : > { %2596 = vmatpush3.bf16.msra.mxu0 %v2879_v12  ;;  %v2896_v29 = vld [vmem:[%s3125_s28 + $0x88] sm:$0xff]   ;;  %v2900_v33 = vld [vmem:[%s3125_s28 + $0x80] sm:$0xff]   ;;  %1634 = vmatprep.mubr.bf16.mxu0 %v2417_v37  ;;  %v2907_v42 = vld [vmem:[%s3125_s28 + $0x138] sm:$0xff]  }
 0x13d   : > { %2618 = vmatpush3.bf16.msra.mxu1 %v2880_v13  ;;  %2597 = vmatprep.subr.bf16.mxu0 %v2881_v14  ;;  %v1058_v35 = vld [vmem:[#allocation2] sm:$0xff]  ;;  %v2908_v43 = vld [vmem:[%s3125_s28 + $0x1b8] sm:$0xff]   ;;  %v2909_v44 = vld [vmem:[%s3125_s28 + $0x170] sm:$0xff]  }
 0x13e   : > { %2619 = vmatprep.subr.bf16.mxu1 %v2882_v15  ;;  %v2418_v38 = vcombine.low %v1058_v35, %v1058_v35  ;;  %v2419_v39 = vcombine.high %v1058_v35, %v1058_v35  ;;  %v2910_v45 = vld [vmem:[%s3125_s28 + $0x1f0] sm:$0xff]   ;;  %v2913_v48 = vld [vmem:[%s3125_s28 + $0x168] sm:$0xff]   ;;  %v2917_v52 = vld [vmem:[%s3125_s28 + $0x160] sm:$0xff]  }
 0x13f   : > { %v2911_v46 = vld [vmem:[%s3125_s28 + $0x130] sm:$0xff]   ;;  %v2914_v49 = vld [vmem:[%s3125_s28 + $0x1e8] sm:$0xff]   ;;  %v2918_v53 = vld [vmem:[%s3125_s28 + $0x1e0] sm:$0xff]  }
 0x140   : > { %2598 = vmatpush3.bf16.msra.mxu0 %v2883_v16  ;;  %1674 = vmatprep.mubr.bf16.mxu1 %v2419_v39  ;;  %v2912_v47 = vld [vmem:[%s3125_s28 + $0x1b0] sm:$0xff]   ;;  %v2915_v50 = vld [vmem:[%s3125_s28 + $0x128] sm:$0xff]   ;;  %v2919_v54 = vld [vmem:[%s3125_s28 + $0x120] sm:$0xff]  }
 0x141   : > { %2620 = vmatpush3.bf16.msra.mxu1 %v2884_v17  ;;  %2599 = vmatprep.subr.bf16.mxu0 %v2885_v18  ;;  %v2916_v51 = vld [vmem:[%s3125_s28 + $0x1a8] sm:$0xff]   ;;  %v2920_v55 = vld [vmem:[%s3125_s28 + $0x1a0] sm:$0xff]   ;;  %v2921_v56 = vld [vmem:[%s3125_s28 + $0x158] sm:$0xff]  }
 0x142   : > { %2621 = vmatprep.subr.bf16.mxu1 %v2886_v19  ;;  %v2922_v57 = vld [vmem:[%s3125_s28 + $0x1d8] sm:$0xff]   ;;  %v2925_v60 = vld [vmem:[%s3125_s28 + $0x150] sm:$0xff]   ;;  %v2929_v0 = vld [vmem:[%s3125_s28 + $0x148] sm:$0xff]  }
 0x143   : > { %v2923_v58 = vld [vmem:[%s3125_s28 + $0x118] sm:$0xff]   ;;  %v2926_v61 = vld [vmem:[%s3125_s28 + $0x1d0] sm:$0xff]   ;;  %v2930_v1 = vld [vmem:[%s3125_s28 + $0x1c8] sm:$0xff]  }
 0x144   : > { %2600 = vmatpush3.bf16.msra.mxu0 %v2887_v20  ;;  %v2924_v59 = vld [vmem:[%s3125_s28 + $0x198] sm:$0xff]   ;;  %v2927_v62 = vld [vmem:[%s3125_s28 + $0x110] sm:$0xff]   ;;  %v2931_v2 = vld [vmem:[%s3125_s28 + $0x108] sm:$0xff]  }
 0x145   : > { %2622 = vmatpush3.bf16.msra.mxu1 %v2888_v21  ;;  %2601 = vmatprep.subr.bf16.mxu0 %v2889_v22  ;;  %v2928_v63 = vld [vmem:[%s3125_s28 + $0x190] sm:$0xff]   ;;  %v2932_v3 = vld [vmem:[%s3125_s28 + $0x188] sm:$0xff]   ;;  %v2933_v4 = vld [vmem:[%s3125_s28 + $0x140] sm:$0xff]  }
 0x146   : > { %2623 = vmatprep.subr.bf16.mxu1 %v2890_v23  ;;  %v2934_v5 = vld [vmem:[%s3125_s28 + $0x1c0] sm:$0xff]   ;;  %v1059_v8 = vld [vmem:[#allocation2 + $0x18] sm:$0xff]  ;;  %v1060_v11 = vld [vmem:[#allocation2 + $0x8] sm:$0xff] }
 0x147   : > { %v2935_v6 = vld [vmem:[%s3125_s28 + $0x100] sm:$0xff]   ;;  %v2420_v9 = vcombine.low %v1059_v8, %v1059_v8  ;;  %v2421_v10 = vcombine.high %v1059_v8, %v1059_v8  ;;  %v2422_v12 = vcombine.low %v1060_v11, %v1060_v11  ;;  %v2423_v13 = vcombine.high %v1060_v11, %v1060_v11 }
 0x148   : > { %2602 = vmatpush3.bf16.msra.mxu0 %v2891_v24  ;;  %v2936_v7 = vld [vmem:[%s3125_s28 + $0x180] sm:$0xff]  }
 0x149   : > { %2624 = vmatpush3.bf16.msra.mxu1 %v2892_v25  ;;  %2603 = vmatprep.subr.bf16.mxu0 %v2893_v26  ;;  %v1189_v23 = vld [vmem:[%s410_s25] sm:$0xff] }
 0x14a   : > { %2625 = vmatprep.subr.bf16.mxu1 %v2894_v27  ;;  %v1767_v37 = vld [vmem:[%s418_s15] sm:$0xff] }
 0x14c   : > { %2604 = vmatpush3.bf16.msra.mxu0 %v2895_v28 }
 0x14d   : > { %2626 = vmatpush3.bf16.msra.mxu1 %v2896_v29  ;;  %2605 = vmatprep.subr.bf16.mxu0 %v2897_v30 }
 0x14e   : > { %2627 = vmatprep.subr.bf16.mxu1 %v2898_v31 }
 0x150   : > { %2606 = vmatpush3.bf16.msra.mxu0 %v2899_v32 }
 0x151   : > { %2628 = vmatpush3.bf16.msra.mxu1 %v2900_v33  ;;  %2635 = vmatprep.subr.bf16.mxu0 %v2905_v40 }
 0x152   : > { %2657 = vmatprep.subr.bf16.mxu1 %v2906_v41 }
 0x153   : > { %1635 = vmatmul.mubr.bf16.vlgmr.msra.gmra.mxu0 %v2416_v36  ;;  %v1763_v36 = vld [vmem:[%s414_s12] sm:$0xff] }
 0x154   : > { %1675 = vmatmul.mubr.bf16.vlgmr.msra.gmra.mxu1 %v2418_v38  ;;  %2636 = vmatpush3.bf16.msra.mxu0 %v2907_v42 }
 0x155   : > { %2658 = vmatpush3.bf16.msra.mxu1 %v2908_v43  ;;  %2637 = vmatprep.subr.bf16.mxu0 %v2909_v44 }
 0x156   : > { %2659 = vmatprep.subr.bf16.mxu1 %v2910_v45  ;;  %1714 = vmatprep.mubr.bf16.mxu0 %v2421_v10 }
 0x157   : > { %1754 = vmatprep.mubr.bf16.mxu1 %v2423_v13 }
 0x158   : > { %2638 = vmatpush3.bf16.msra.mxu0 %v2911_v46 }
 0x159   : > { %2660 = vmatpush3.bf16.msra.mxu1 %v2912_v47  ;;  %2639 = vmatprep.subr.bf16.mxu0 %v2913_v48 }
 0x15a   : > { %2661 = vmatprep.subr.bf16.mxu1 %v2914_v49 }
 0x15c   : > { %2640 = vmatpush3.bf16.msra.mxu0 %v2915_v50 }
 0x15d   : > { %2662 = vmatpush3.bf16.msra.mxu1 %v2916_v51  ;;  %2641 = vmatprep.subr.bf16.mxu0 %v2917_v52 }
 0x15e   : > { %2663 = vmatprep.subr.bf16.mxu1 %v2918_v53 }
 0x160   : > { %2642 = vmatpush3.bf16.msra.mxu0 %v2919_v54 }
 0x161   : > { %2664 = vmatpush3.bf16.msra.mxu1 %v2920_v55  ;;  %2643 = vmatprep.subr.bf16.mxu0 %v2921_v56 }
 0x162   : > { %2665 = vmatprep.subr.bf16.mxu1 %v2922_v57 }
 0x164   : > { %2644 = vmatpush3.bf16.msra.mxu0 %v2923_v58 }
 0x165   : > { %2666 = vmatpush3.bf16.msra.mxu1 %v2924_v59  ;;  %2645 = vmatprep.subr.bf16.mxu0 %v2925_v60 }
 0x166   : > { %2667 = vmatprep.subr.bf16.mxu1 %v2926_v61 }
 0x168   : > { %2646 = vmatpush3.bf16.msra.mxu0 %v2927_v62 }
 0x169   : > { %2668 = vmatpush3.bf16.msra.mxu1 %v2928_v63  ;;  %2647 = vmatprep.subr.bf16.mxu0 %v2929_v0 }
 0x16a   : > { %2669 = vmatprep.subr.bf16.mxu1 %v2930_v1 }
 0x16c   : > { %2648 = vmatpush3.bf16.msra.mxu0 %v2931_v2 }
 0x16d   : > { %2670 = vmatpush3.bf16.msra.mxu1 %v2932_v3  ;;  %2649 = vmatprep.subr.bf16.mxu0 %v2933_v4 }
 0x16e   : > { %2671 = vmatprep.subr.bf16.mxu1 %v2934_v5 }
 0x170   : > { %2650 = vmatpush3.bf16.msra.mxu0 %v2935_v6 }
 0x171   : > { %2672 = vmatpush3.bf16.msra.mxu1 %v2936_v7 }
 0x173   : > { %1715 = vmatmul.mubr.bf16.vlgmr.msra.gmra.mxu0 %v2420_v9 }
 0x174   : > { %1755 = vmatmul.mubr.bf16.vlgmr.msra.gmra.mxu1 %v2422_v12 }
 0x213   : > { %v2607_v14 = vpop.f32.mrf.mxu0 }
 0x214   : > { %v2629_v15 = vpop.f32.mrf.mxu1 }
 0x215   : > { %v2608_v16 = vpop.f32.mrf.mxu0 }
 0x216   : > { %v2630_v17 = vpop.f32.mrf.mxu1  ;;  %v2609_v22 = vadd.f32 %v2608_v16, %v2607_v14 }
 0x217   : > { %v2610_v18 = vpop.f32.mrf.mxu0  ;;  %v2631_v25 = vadd.f32 %v2630_v17, %v2629_v15 }
 0x218   : > { %v2632_v19 = vpop.f32.mrf.mxu1  ;;  %v1637_v24 = vadd.f32 %v2609_v22, %v1189_v23 }
 0x219   : > { %v2611_v20 = vpop.f32.mrf.mxu0 }
 0x21a   : > { %v2633_v21 = vpop.f32.mrf.mxu1  ;;  %v1677_v30 = vadd.f32 %v2631_v25, %v1637_v24 }
 0x233   : > { %v2651_v26 = vpop.f32.mrf.mxu0 }
 0x234   : > { %v2673_v27 = vpop.f32.mrf.mxu1 }
 0x235   : > { %v2652_v28 = vpop.f32.mrf.mxu0 }
 0x236   : > { %v2674_v29 = vpop.f32.mrf.mxu1  ;;  %v2653_v31 = vadd.f32 %v2652_v28, %v2651_v26 }
 0x237   : > { %v2654_v32 = vpop.f32.mrf.mxu0  ;;  %v2675_v35 = vadd.f32 %v2674_v29, %v2673_v27 }
 0x238   : > { %v2676_v33 = vpop.f32.mrf.mxu1  ;;  %v1717_v34 = vadd.f32 %v2653_v31, %v1677_v30 }
 0x239   : > { %v2655_v38 = vpop.f32.mrf.mxu0 }
 0x23a   : > { %v2677_v39 = vpop.f32.mrf.mxu1  ;;  %v1757_v40 = vadd.f32 %v2675_v35, %v1717_v34  ;;  %1774 = sbr.rel (%p2489_p6) target bundleno = 1236 (0x4d4), region = 60 }
 0x23c   : > { %v1764_v41 = vadd.f32 %v1763_v36, %v1757_v40  ;;  %v1768_v42 = vadd.f32 %v1767_v37, %v1757_v40 }
 0x23e   : > { %1766 = vst [vmem:[%s1765_s27] sm:$0xff] %v1764_v41  ;;  %1770 = vst [vmem:[%s1769_s29] sm:$0xff] %v1768_v42 }
 0x23f   : > { %v1783_v43 = vlaneseq  ;;  %v1795_v49 = vld [vmem:[%s3553_s7] sm:$0xff]  ;;  %v3037_v58 = vmov 1.0   ;;  %v1796_v62 = vld [vmem:[%s3553_s7 + $0x8] sm:$0xff]  ;;  %v1797_v63 = vld [vmem:[%s3553_s7 + $0x10] sm:$0xff]  ;;  %vm1934_vm15 = vcmask 261120   ;;  %v3038_v30 = vmov 0.0  }
 0x240   : > { %2723 = vmatprep.mubr.f32.mxu0 %v1795_v49  ;;  %v1798_v0 = vld [vmem:[%s3553_s7 + $0x18] sm:$0xff]  ;;  %v1799_v1 = vld [vmem:[%s3553_s7 + $0x20] sm:$0xff]  ;;  %v1800_v2 = vld [vmem:[%s3553_s7 + $0x28] sm:$0xff] }
 0x241   : > { %v3430_v46 = vand.u32 127, %v1783_v43  ;;  %v1786_v50 = vshrl.u32 %v1783_v43, 7  ;;  %v1801_v3 = vld [vmem:[%s3553_s7 + $0x30] sm:$0xff]  ;;  %v1802_v4 = vld [vmem:[%s3553_s7 + $0x38] sm:$0xff] }
 0x243   : > { %vm1790_vm9 = vcmp.eq.s32.totalorder %v3430_v46, 16  ;;  %v1789_v51 = vadd.s32 24, %v1786_v50  ;;  %v1788_v5 = vadd.s32 16, %v1786_v50  ;;  %v1787_v7 = vadd.s32 8, %v1786_v50 }
 0x244   : > { %vm1931_vm14 = vcmp.eq.s32.totalorder %v3430_v46, 48 }
 0x245   : > { %v1778_v44 = vld [vmem:[#allocation3 + $0x18] sm:$0xff]  ;;  %v1777_v47 = vld [vmem:[#allocation3 + $0x10] sm:$0xff]  ;;  %v1776_v54 = vld [vmem:[#allocation3 + $0x8] sm:$0xff]  ;;  %v1918_v56 = vadd.s32 16, %v1789_v51  ;;  %v1917_v6 = vadd.s32 16, %v1788_v5  ;;  %v1916_v8 = vadd.s32 16, %v1787_v7  ;;  %vm1919_vm13 = vcmp.eq.s32.totalorder %v3430_v46, %v1788_v5 }
 0x246   : > { %v1782_v45 = vld [vmem:[#allocation5 + $0x18] sm:$0xff]  ;;  %v1781_v48 = vld [vmem:[#allocation5 + $0x10] sm:$0xff]  ;;  %v1780_v55 = vld [vmem:[#allocation5 + $0x8] sm:$0xff]  ;;  %v2494_v31 = vsel %vm1931_vm14, 1.0, %v3038_v30 }
 0x247   : > { %v1794_v52 = vsel %vm1790_vm9, %v1782_v45, %v1778_v44  ;;  %v1793_v53 = vsel %vm1790_vm9, %v1781_v48, %v1777_v47  ;;  %vm1922_vm10 = vcmp.eq.s32.totalorder %v3430_v46, %v1918_v56  ;;  %v1792_v57 = vsel %vm1790_vm9, %v1780_v55, %v1776_v54  ;;  %v3443_v59 = vld [vmem:[#allocation3] sm:$0xff] }
 0x248   : > { %2715 = vmatprep.subr.mxu0 %v1794_v52  ;;  %2735 = vmatprep.subr.msk.mxu1 %vm1922_vm10, %v3037_v58  ;;  %v3445_v60 = vld [vmem:[#allocation5] sm:$0xff]  ;;  %vm1921_vm11 = vcmp.eq.s32.totalorder %v3430_v46, %v1917_v6  ;;  %vm1920_vm12 = vcmp.eq.s32.totalorder %v3430_v46, %v1916_v8  ;;  %v2067_v9 = vsel %vm1931_vm14, %v1782_v45, %v1778_v44 }
 0x249   : > { %2716 = vmatpush3.xpose.msra.mxu0 %v1794_v52  ;;  %2736 = vmatpush3.msk.msra.mxu1 %vm1922_vm10, %v3037_v58  ;;  %v1791_v61 = vsel %vm1790_vm9, %v3445_v60, %v3443_v59  ;;  %v2066_v10 = vsel %vm1931_vm14, %v1781_v48, %v1777_v47  ;;  %v2065_v11 = vsel %vm1931_vm14, %v1780_v55, %v1776_v54 }
 0x24a   : > { %2717 = vmatprep.subr.mxu0 %v1793_v53  ;;  %2737 = vmatprep.subr.msk.mxu1 %vm1921_vm11, %v3037_v58  ;;  %v2064_v28 = vsel %vm1931_vm14, %v3445_v60, %v3443_v59 }
 0x24b   : > { %2738 = vmatpush3.msk.msra.mxu1 %vm1921_vm11, %v3037_v58 }
 0x24c   : > { %2739 = vmatprep.subr.msk.mxu1 %vm1920_vm12, %v3037_v58 }
 0x24d   : > { %2718 = vmatpush3.xpose.msra.mxu0 %v1793_v53  ;;  %2740 = vmatpush3.msk.msra.mxu1 %vm1920_vm12, %v3037_v58 }
 0x24e   : > { %2719 = vmatprep.subr.mxu0 %v1792_v57  ;;  %2741 = vmatprep.subr.msk.mxu1 %vm1919_vm13, %v3037_v58 }
 0x24f   : > { %2742 = vmatpush3.msk.msra.mxu1 %vm1919_vm13, %v3037_v58 }
 0x250   : > { %2775 = vmatprep.subr.mxu1 %v2067_v9 }
 0x251   : > { %2720 = vmatpush3.xpose.msra.mxu0 %v1792_v57 }
 0x252   : > { %2721 = vmatprep.subr.mxu0 %v1791_v61 }
 0x255   : > { %2722 = vmatpush3.xpose.msra.mxu0 %v1791_v61 }
 0x256   : > { %2755 = vmatprep.subr.mxu0 %v2067_v9 }
 0x258   : > { %2724 = vmatmul.mubr.f32.vlgmr.msra.gmra.mxu0 %v1796_v62 }
 0x259   : > { %2726 = vmatprep.mubr.f32.mxu0 %v1797_v63  ;;  %2756 = vmatpush3.xpose.msra.mxu0 %v2067_v9 }
 0x25a   : > { %2757 = vmatprep.subr.mxu0 %v2066_v10 }
 0x25c   : > { %2727 = vmatmul.mubr.f32.gmra.mxu0 %v1798_v0 }
 0x25d   : > { %2729 = vmatprep.mubr.f32.mxu0 %v1799_v1  ;;  %2758 = vmatpush3.xpose.msra.mxu0 %v2066_v10 }
 0x25e   : > { %2759 = vmatprep.subr.mxu0 %v2065_v11 }
 0x260   : > { %2730 = vmatmul.mubr.f32.gmra.mxu0 %v1800_v2 }
 0x261   : > { %2732 = vmatprep.mubr.f32.mxu0 %v1801_v3  ;;  %2760 = vmatpush3.xpose.msra.mxu0 %v2065_v11 }
 0x262   : > { %2761 = vmatprep.subr.mxu0 %v2064_v28 }
 0x264   : > { %2733 = vmatmul.mubr.f32.gmra.mxu0 %v1802_v4 }
 0x265   : > { %2762 = vmatpush3.xpose.msra.mxu0 %v2064_v28 }
 0x318   : > { %v2725_v12 = vpop.f32.mrf.mxu0 }
 0x319   : > { %v1909_v15 = vmax.f32 %v2725_v12, 0.0 }
 0x31a   : > { %v1869_v13 = vpop.f32.mrf.mxu0 }
 0x31b   : > { %v1908_v14 = vmax.f32 %v1869_v13, 0.0 }
 0x31c   : > { %v2728_v16 = vpop.f32.mrf.mxu0 }
 0x31d   : > { %2743 = vmatprep.mubr.msk.f32.mxu1 %vm1934_vm15, %v1908_v14  ;;  %v1911_v19 = vmax.f32 %v2728_v16, 0.0 }
 0x31e   : > { %v1879_v17 = vpop.f32.mrf.mxu0  ;;  %2744 = vmatmul.mubr.msk.f32.vlgmr.msra.gmra.mxu1 %vm1934_vm15, %v1909_v15 }
 0x31f   : > { %v1910_v18 = vmax.f32 %v1879_v17, 0.0  ;;  %2779 = vmatpush3.xpose.msra.mxu1 %v2067_v9 }
 0x320   : > { %v2731_v20 = vpop.f32.mrf.mxu0  ;;  %2776 = vmatprep.subr.mxu1 %v2066_v10 }
 0x321   : > { %2746 = vmatprep.mubr.msk.f32.mxu1 %vm1934_vm15, %v1910_v18  ;;  %v1913_v23 = vmax.f32 %v2731_v20, 0.0 }
 0x322   : > { %v1889_v21 = vpop.f32.mrf.mxu0  ;;  %2747 = vmatmul.mubr.msk.f32.gmra.mxu1 %vm1934_vm15, %v1911_v19 }
 0x323   : > { %v1912_v22 = vmax.f32 %v1889_v21, 0.0  ;;  %2780 = vmatpush3.xpose.msra.mxu1 %v2066_v10 }
 0x324   : > { %v2734_v24 = vpop.f32.mrf.mxu0  ;;  %2777 = vmatprep.subr.mxu1 %v2065_v11 }
 0x325   : > { %2749 = vmatprep.mubr.msk.f32.mxu1 %vm1934_vm15, %v1912_v22  ;;  %v1915_v27 = vmax.f32 %v2734_v24, 0.0 }
 0x326   : > { %v1899_v25 = vpop.f32.mrf.mxu0  ;;  %2750 = vmatmul.mubr.msk.f32.gmra.mxu1 %vm1934_vm15, %v1913_v23 }
 0x327   : > { %v1914_v26 = vmax.f32 %v1899_v25, 0.0  ;;  %2781 = vmatpush3.xpose.msra.mxu1 %v2065_v11 }
 0x328   : > { %2778 = vmatprep.subr.mxu1 %v2064_v28 }
 0x329   : > { %2752 = vmatprep.mubr.msk.f32.mxu1 %vm1934_vm15, %v1914_v26 }
 0x32a   : > { %2753 = vmatmul.mubr.msk.f32.gmra.mxu1 %vm1934_vm15, %v1915_v27 }
 0x32b   : > { %2782 = vmatpush3.xpose.msra.mxu1 %v2064_v28 }
 0x3de   : > { %v2745_v29 = vpop.f32.mrf.mxu1 }
 0x3df   : > { %v2031_v34 = vadd.f32 %v2745_v29, %v2494_v31 }
 0x3e0   : > { %v2025_v32 = vpop.f32.mrf.mxu1 }
 0x3e1   : > { %v2026_v33 = vadd.f32 %v2494_v31, %v2025_v32 }
 0x3e2   : > { %v2748_v35 = vpop.f32.mrf.mxu1 }
 0x3e3   : > { %2763 = vmatprep.mubr.f32.mxu0 %v2026_v33  ;;  %v2041_v38 = vadd.f32 %v2748_v35, %v2494_v31 }
 0x3e4   : > { %v2035_v36 = vpop.f32.mrf.mxu1  ;;  %2764 = vmatmul.mubr.f32.vlgmr.msra.gmra.mxu0 %v2031_v34 }
 0x3e5   : > { %v2036_v37 = vadd.f32 %v2494_v31, %v2035_v36 }
 0x3e6   : > { %v2751_v39 = vpop.f32.mrf.mxu1 }
 0x3e7   : > { %2766 = vmatprep.mubr.f32.mxu1 %v2036_v37  ;;  %v2051_v42 = vadd.f32 %v2751_v39, %v2494_v31 }
 0x3e8   : > { %v2045_v40 = vpop.f32.mrf.mxu1  ;;  %2767 = vmatmul.mubr.f32.vlgmr.msra.gmra.mxu1 %v2041_v38 }
 0x3e9   : > { %v2046_v41 = vadd.f32 %v2494_v31, %v2045_v40 }
 0x3ea   : > { %v2754_v43 = vpop.f32.mrf.mxu1 }
 0x3eb   : > { %2769 = vmatprep.mubr.f32.mxu1 %v2046_v41  ;;  %v2061_v46 = vadd.f32 %v2754_v43, %v2494_v31 }
 0x3ec   : > { %v2055_v44 = vpop.f32.mrf.mxu1  ;;  %2770 = vmatmul.mubr.f32.gmra.mxu1 %v2051_v42 }
 0x3ed   : > { %v2056_v45 = vadd.f32 %v2494_v31, %v2055_v44 }
 0x3ef   : > { %2772 = vmatprep.mubr.f32.mxu1 %v2056_v45 }
 0x3f0   : > { %2773 = vmatmul.mubr.f32.gmra.mxu1 %v2061_v46 }
 0x4a4   : > { %v2765_v47 = vpop.f32.mrf.mxu0 }
 0x4a5   : > { %v2508_v48 = vmul.f32 -1.442695, %v2765_v47 }
 0x4a6   : > { %v2134_v49 = vpop.f32.mrf.mxu0 }
 0x4a7   : > { %2941 = vpow2.f32 %v2508_v48  ;;  %v2507_v50 = vmul.f32 -1.442695, %v2134_v49 }
 0x4a8   : > { %v2768_v51 = vpop.f32.mrf.mxu1 }
 0x4a9   : > { %2943 = vpow2.f32 %v2507_v50  ;;  %v2510_v52 = vmul.f32 -1.442695, %v2768_v51 }
 0x4aa   : > { %v2144_v53 = vpop.f32.mrf.mxu1 }
 0x4ab   : > { %2945 = vpow2.f32 %v2510_v52  ;;  %v2509_v54 = vmul.f32 -1.442695, %v2144_v53 }
 0x4ac   : > { %v2771_v55 = vpop.f32.mrf.mxu1 }
 0x4ad   : > { %2947 = vpow2.f32 %v2509_v54  ;;  %v2512_v56 = vmul.f32 -1.442695, %v2771_v55 }
 0x4ae   : > { %v2154_v57 = vpop.f32.mrf.mxu1 }
 0x4af   : > { %2949 = vpow2.f32 %v2512_v56  ;;  %v2511_v58 = vmul.f32 -1.442695, %v2154_v57 }
 0x4b0   : > { %v2774_v59 = vpop.f32.mrf.mxu1 }
 0x4b1   : > { %2951 = vpow2.f32 %v2511_v58  ;;  %v2514_v60 = vmul.f32 -1.442695, %v2774_v59 }
 0x4b2   : > { %v2164_v61 = vpop.f32.mrf.mxu1 }
 0x4b3   : > { %2953 = vpow2.f32 %v2514_v60  ;;  %v2513_v62 = vmul.f32 -1.442695, %v2164_v61 }
 0x4b4   : > { %v2942_v63 = vpop.eup %2941 }
 0x4b5   : > { %v2198_v0 = vadd.f32 1.0, %v2942_v63  ;;  %2955 = vpow2.f32 %v2513_v62 }
 0x4b6   : > { %v2944_v1 = vpop.eup %2943 }
 0x4b7   : > { %2957 = vrcp.f32 %v2198_v0  ;;  %v2197_v2 = vadd.f32 1.0, %v2944_v1 }
 0x4b8   : > { %v2946_v3 = vpop.eup %2945 }
 0x4b9   : > { %2959 = vrcp.f32 %v2197_v2  ;;  %v2200_v4 = vadd.f32 1.0, %v2946_v3 }
 0x4ba   : > { %v2948_v5 = vpop.eup %2947 }
 0x4bb   : > { %2961 = vrcp.f32 %v2200_v4  ;;  %v2199_v6 = vadd.f32 1.0, %v2948_v5 }
 0x4bc   : > { %v2950_v7 = vpop.eup %2949 }
 0x4bd   : > { %2963 = vrcp.f32 %v2199_v6  ;;  %v2202_v8 = vadd.f32 1.0, %v2950_v7 }
 0x4be   : > { %v2952_v9 = vpop.eup %2951 }
 0x4bf   : > { %2965 = vrcp.f32 %v2202_v8  ;;  %v2201_v10 = vadd.f32 1.0, %v2952_v9 }
 0x4c0   : > { %v2954_v11 = vpop.eup %2953 }
 0x4c1   : > { %2967 = vrcp.f32 %v2201_v10  ;;  %v2204_v12 = vadd.f32 1.0, %v2954_v11 }
 0x4c2   : > { %v2956_v13 = vpop.eup %2955 }
 0x4c3   : > { %2969 = vrcp.f32 %v2204_v12  ;;  %v2203_v14 = vadd.f32 1.0, %v2956_v13 }
 0x4c4   : > { %v2958_v15 = vpop.eup %2957 }
 0x4c5   : > { %2222 = vst [vmem:[%s3557_s11 + $0x8] sm:$0xff] %v2958_v15  ;;  %2971 = vrcp.f32 %v2203_v14 }
 0x4c6   : > { %v2960_v16 = vpop.eup %2959 }
 0x4c7   : > { %2221 = vst [vmem:[%s3557_s11] sm:$0xff] %v2960_v16 }
 0x4c8   : > { %v2962_v17 = vpop.eup %2961 }
 0x4c9   : > { %2224 = vst [vmem:[%s3557_s11 + $0x18] sm:$0xff] %v2962_v17 }
 0x4ca   : > { %v2964_v18 = vpop.eup %2963 }
 0x4cb   : > { %2223 = vst [vmem:[%s3557_s11 + $0x10] sm:$0xff] %v2964_v18 }
 0x4cc   : > { %v2966_v19 = vpop.eup %2965 }
 0x4cd   : > { %2226 = vst [vmem:[%s3557_s11 + $0x28] sm:$0xff] %v2966_v19 }
 0x4ce   : > { %v2968_v20 = vpop.eup %2967 }
 0x4cf   : > { %2225 = vst [vmem:[%s3557_s11 + $0x20] sm:$0xff] %v2968_v20 }
 0x4d0   : > { %v2970_v21 = vpop.eup %2969 }
 0x4d1   : > { %2228 = vst [vmem:[%s3557_s11 + $0x38] sm:$0xff] %v2970_v21 }
 0x4d2   : > { %v2972_v22 = vpop.eup %2971 }
 0x4d3   : > { %2227 = vst [vmem:[%s3557_s11 + $0x30] sm:$0xff] %v2972_v22 }
 0x4d4 PF: > { %p2791_p7 = scmp.eq.s32.totalorder %s3109_s18, 3  ;;  %s3039_s27 = smov [#allocation3]  }
 0x4d5   : > { %s2235_s29 = sshll.u32 %s3039_s27, 4  ;;  %s2236_s29 = int_to_ptr.vmem [resolvable:$true] %s2235_s29 }
 0x4d6   : > { %s2973_s21 = scalar_lea.vmem %s2236_s29, 512  ;;  %p2980_p11 = scmp.lt.s32.totalorder %s2236_s29, %s2236_s29 }
 0x4d7   : > { %p2974_p8 = scmp.ne.s32.totalorder %s2236_s29, %s2973_s21  ;;  %p2981_p12 = scmp.lt.s32.totalorder %s2973_s21, %s2973_s21 }
 0x4d9   : > { %p2975_p9 = pnand %p2974_p8, %p2791_p7  ;;  %p2982_p13 = por %p2981_p12, %p2980_p11 }
 0x4db   : > { %p2976_p10 = pneg %p2975_p9 }
 0x4dd   : > { %p2983_p0 = pnand %p2982_p13, %p2976_p10 }
 0x4df   : > { %2986 = shalt.err (!%p2983_p0)
}
 0x4e0   : > { %s3040_s12 = smov 128   ;;  %s3041_s15 = smov 8  }
 0x4e1   : > { %2784 = dma.vmem_to_hbm [thread:$0]  (%p2791_p7), %s2236_s29, 512, %s3554_s8, [#allocation4], %s3040_s12, %s3040_s12, %s3041_s15  }
 0x4e2   : > { %s3042_s14 = smov [#allocation5]  }
 0x4e3   : > { %s2248_s16 = sshll.u32 %s3042_s14, 4  ;;  %s2249_s16 = int_to_ptr.vmem [resolvable:$true] %s2248_s16 }
 0x4e4   : > { %s2997_s19 = scalar_lea.vmem %s2249_s16, 512  ;;  %p3004_p4 = scmp.lt.s32.totalorder %s2249_s16, %s2249_s16 }
 0x4e5   : > { %p2998_p1 = scmp.ne.s32.totalorder %s2249_s16, %s2997_s19  ;;  %p3005_p5 = scmp.lt.s32.totalorder %s2997_s19, %s2997_s19 }
 0x4e7   : > { %p2999_p2 = pnand %p2998_p1, %p2791_p7  ;;  %p3006_p6 = por %p3005_p5, %p3004_p4 }
 0x4e9   : > { %p3000_p3 = pneg %p2999_p2 }
 0x4eb   : > { %p3007_p8 = pnand %p3006_p6, %p3000_p3 }
 0x4ed   : > { %3010 = shalt.err (!%p3007_p8)
}
 0x4ee   : > { %2786 = dma.vmem_to_hbm [thread:$0]  (%p2791_p7), %s2249_s16, 512, %s3555_s9, [#allocation6], %s3040_s12, %s3040_s12, %s3041_s15  }
 0x4ef   : > { %3026 = dma.done.wait (%p2791_p7), [#allocation4], 512  }
 0x4f0   : > { %3028 = vsyncadd (%p2791_p7), [#allocation4], 4294966784 }
 0x4f1   : > { %3030 = dma.done.wait (%p2791_p7), [#allocation6], 512  }
 0x4f2   : > { %3032 = vsyncadd (%p2791_p7), [#allocation6], 4294966784 }
 0x4f3 PF: > { %s24_s17 = sadd.s32 1, %s3035_s17  }
 0x4f4   : > { %p21_p9 = scmp.ge.s32.totalorder %s24_s17, 6  }
 0x4f6   :  { %23 = sbr.rel (!%p21_p9) target bundleno = 2 (0x2), region = 122 }
 0x4fb   :  { %2280 = vsyncpa [#allocation4], 1 }
 0x4fc   :  { %2282 = vsyncpa [#allocation4 + $0x1], 1 }
 0x4fd   :  { %2283 = vsyncpa [#allocation6], 1 }

</bundles_post_ra>
